<compile_context>
chip_gen: v7x
topology: tpu7x:2x2x1
jax: 0.10.0
libtpu: 0.0.40
codegen_flags: <defaults>
</compile_context>

<pallas_src>
import jax
import jax.numpy as jnp
from jax import lax
from jax.experimental import pallas as pl
from jax.experimental.pallas import tpu as pltpu

EPS = 1e-12  # F.normalize eps
NUM_LAYERS = 7


# ------------------------------ fused kernel --------------------------------

def _gnn_close_fused_kernel(adj1t_ref, adj2t_ref, gc1t_ref, gcst_ref,
                            w1t_ref, b1_ref, w2t_ref, b2_ref, w3_ref, b3_ref,
                            o_ref, slab_ref):
    """Entire GNN_Close forward, feature-major layout, one invocation (no grid).

    Shapes (H = nhid, N = num nodes):
      adj1t, adj2t : (N, N)      transposed adjacencies
      gc1t         : (H, N)      gc1 weight, transposed
      gcst         : (6, H, H)   gc2..gc7 weights, transposed, stacked
      w1t,b1       : (2H, H), (2H, 1)
      w2t,b2       : (2H, 2H), (2H, 1)
      w3           : (2H, 1)
      b3           : (1,)  in SMEM
      o            : (1, N)      lane-dense score row (sum of the 7 MLP scores)
      slab         : (H, 7N)     VMEM scratch holding all x_k^T for batched MLP
    """
    H = gc1t_ref.shape[0]
    N = o_ref.shape[1]

    def l2norm_cols(y):
        # F.normalize(x, p=2, dim=1) on the row-major x == per-column normalize
        # on x^T.  rsqrt(max(ss, eps^2)) == 1 / max(sqrt(ss), eps) (sqrt is
        # monotone); rsqrt runs on the otherwise-idle EUP slot.
        ss = jnp.sum(y * y, axis=0, keepdims=True)          # (1, N)
        return y * lax.rsqrt(jnp.maximum(ss, EPS * EPS))

    # ---- layer 1: x1^T = l2norm(relu(gc1^T @ adj1^T)) -----------------------
    x = jnp.maximum(
        jnp.dot(gc1t_ref[...], adj1t_ref[...],
                preferred_element_type=jnp.float32), 0.0)    # (H, N)
    x = l2norm_cols(x)
    slab_ref[:, 0:N] = x

    # ---- layers 2..7: xk^T = relu((gck^T @ x) @ adj2^T) ----------------------
    # (normalize for k=2..6, not for k=7).  adj2t_ref is re-read at each use
    # site (not hoisted) so it is not pinned in vregs across the unrolled loop.
    for l in range(6):
        s = jnp.dot(gcst_ref[l], x, preferred_element_type=jnp.float32)   # (H, N)
        y = jnp.maximum(
            jnp.dot(s, adj2t_ref[...], preferred_element_type=jnp.float32),
            0.0)                                                           # (H, N)
        x = l2norm_cols(y) if l < 5 else y
        slab_ref[:, (l + 1) * N:(l + 2) * N] = x

    # ---- batched MLP over the whole (H, 7N) slab ----------------------------
    # TODO(synk): F.dropout in the reference MLP is omitted (eval / p=0 mode).
    h = jnp.dot(w1t_ref[...], slab_ref[...],
                preferred_element_type=jnp.float32)                        # (2H, 7N)
    h = jnp.maximum(h + b1_ref[...], 0.0)
    h = jnp.dot(w2t_ref[...], h, preferred_element_type=jnp.float32)       # (2H, 7N)
    h = jnp.maximum(h + b2_ref[...], 0.0)
    # (2H -> 1) projection: VPU multiply + sublane reduction (no M=1 matmul).
    s_all = jnp.sum(h * w3_ref[...], axis=0, keepdims=True) + b3_ref[0]    # (1, 7N)

    # Sum the 7 lane-aligned N-wide segments -> accumulated score row.
    score = s_all[:, 0:N]
    for k in range(1, NUM_LAYERS):
        score = score + s_all[:, k * N:(k + 1) * N]
    o_ref[...] = score                                                     # (1, N)


# ------------------------------- wrappers ------------------------------------

def prepare_gnn_close(params, adj1, adj2):
    """One-time prep: all transposes / stacking / reshapes hoisted out of the
    per-call forward so the forward is a single custom call."""
    m = params["mlp"]
    return {
        "adj1_t": adj1.T,
        "adj2_t": adj2.T,
        "gc1_t": params["gc1"].T,                                         # (H, N)
        "gcs_t": jnp.stack([params[f"gc{k}"].T for k in range(2, 8)], 0),  # (6,H,H)
        "w1_t": m["w1"].T,                  # (2H, H)
        "b1_c": m["b1"].reshape(-1, 1),     # (2H, 1)
        "w2_t": m["w2"].T,                  # (2H, 2H)
        "b2_c": m["b2"].reshape(-1, 1),     # (2H, 1)
        "w3_c": m["w3"].reshape(-1, 1),     # (2H, 1)
        "b3": m["b3"].reshape(1),           # (1,) scalar for SMEM
    }


def gnn_close_forward(prep):
    N = prep["adj1_t"].shape[0]
    H = prep["gc1_t"].shape[0]

    def vmem():
        return pl.BlockSpec(memory_space=pltpu.MemorySpace.VMEM)

    score_row = pl.pallas_call(
        _gnn_close_fused_kernel,
        out_shape=jax.ShapeDtypeStruct((1, N), jnp.float32),
        in_specs=[vmem(), vmem(), vmem(), vmem(),          # adj1^T, adj2^T, gc1^T, gcs^T
                  vmem(), vmem(), vmem(), vmem(), vmem(),  # w1^T, b1, w2^T, b2, w3
                  pl.BlockSpec(memory_space=pltpu.MemorySpace.SMEM)],  # b3 scalar
        out_specs=vmem(),
        scratch_shapes=[pltpu.VMEM((H, NUM_LAYERS * N), jnp.float32)],
    )(prep["adj1_t"], prep["adj2_t"], prep["gc1_t"], prep["gcs_t"],
      prep["w1_t"], prep["b1_c"], prep["w2_t"], prep["b2_c"], prep["w3_c"],
      prep["b3"])
    # Tiny wrapper-side reshape back to the module's (N, 1) output contract.
    return score_row.reshape(N, 1)


# ------------------------- parameter construction ---------------------------

def init_params(key, ninput, nhid):
    """Deterministic synthetic parameters matching GNN_Close.__init__ shapes."""
    ks = jax.random.split(key, 16)
    stdv = 1.0 / jnp.sqrt(jnp.float32(nhid))

    def u(k, shape, bound):
        return jax.random.uniform(k, shape, jnp.float32, -bound, bound)

    params = {
        "gc1": u(ks[0], (ninput, nhid), stdv),             # GNN_Layer_Init weight
    }
    for li in range(2, 8):                                 # gc2..gc7: (nhid, nhid)
        params[f"gc{li}"] = u(ks[li - 1], (nhid, nhid), stdv)

    h2 = 2 * nhid
    b_l1 = 1.0 / jnp.sqrt(jnp.float32(nhid))
    b_l2 = 1.0 / jnp.sqrt(jnp.float32(h2))
    params["mlp"] = {
        "w1": u(ks[8], (nhid, h2), b_l1), "b1": u(ks[9], (1, h2), b_l1),
        "w2": u(ks[10], (h2, h2), b_l2), "b2": u(ks[11], (1, h2), b_l2),
        "w3": u(ks[12], (h2, 1), b_l2), "b3": u(ks[13], (1, 1), b_l2),
    }
    return params


# --------------------------- pure-JAX reference -----------------------------

def _ref_forward(params, adj1, adj2):
    def norm(y):
        n = jnp.sqrt(jnp.sum(y * y, axis=1, keepdims=True))
        return y / jnp.maximum(n, EPS)

    def mlp(x, m):
        h = jnp.maximum(x @ m["w1"] + m["b1"], 0.0)
        h = jnp.maximum(h @ m["w2"] + m["b2"], 0.0)
        return h @ m["w3"] + m["b3"]

    x1 = norm(jnp.maximum(adj1 @ params["gc1"], 0.0))
    xs = [x1]
    x = x1
    for li in range(2, 7):
        x = norm(jnp.maximum(adj2 @ (x @ params[f"gc{li}"]), 0.0))
        xs.append(x)
    x7 = jnp.maximum(adj2 @ (x @ params["gc7"]), 0.0)
    xs.append(x7)
    return sum(mlp(xi, params["mlp"]) for xi in xs)


# ---------------------------------- main -------------------------------------

if __name__ == "__main__":
    N = 128         # number of nodes (ninput == N in this model)
    NHID = 32
    DROPOUT = 0.0   # deterministic (see TODO in the kernel)

    key = jax.random.PRNGKey(0)
    k_p, k_a1, k_a2 = jax.random.split(key, 3)

    params = init_params(k_p, N, NHID)
    # Synthetic dense "adjacency" matrices (the model uses sparse adj in torch;
    # dense matmul is numerically equivalent).
    adj1 = (jax.random.uniform(k_a1, (N, N), jnp.float32) < 0.1).astype(jnp.float32) / 8.0
    adj2 = (jax.random.uniform(k_a2, (N, N), jnp.float32) < 0.1).astype(jnp.float32) / 8.0

    prep = prepare_gnn_close(params, adj1, adj2)   # one-time prep (hoisted)
    score = gnn_close_forward(prep)                # single fused custom call
    score = jax.block_until_ready(score)

    ref = _ref_forward(params, adj1, adj2)
    assert score.shape == (N, 1)
    assert jnp.allclose(score, ref, atol=1e-4, rtol=1e-4), "mismatch vs reference"

    print("KERNEL_OK")
</pallas_src>

<mosaic_0001>
module attributes {stable_mosaic.version = 11 : i64} {
  func.func @_gnn_close_fused_kernel(%arg0: memref<128x128xf32, #tpu.memory_space<vmem>>, %arg1: memref<128x128xf32, #tpu.memory_space<vmem>>, %arg2: memref<32x128xf32, #tpu.memory_space<vmem>>, %arg3: memref<6x32x32xf32, #tpu.memory_space<vmem>>, %arg4: memref<64x32xf32, #tpu.memory_space<vmem>>, %arg5: memref<64x1xf32, #tpu.memory_space<vmem>>, %arg6: memref<64x64xf32, #tpu.memory_space<vmem>>, %arg7: memref<64x1xf32, #tpu.memory_space<vmem>>, %arg8: memref<64x1xf32, #tpu.memory_space<vmem>>, %arg9: memref<1xf32, #tpu.memory_space<smem>>, %arg10: memref<1x128xf32, #tpu.memory_space<vmem>>, %arg11: memref<32x896xf32, #tpu.memory_space<vmem>>) attributes {dimension_semantics = [], scalar_prefetch = 0 : i64, scratch_operands = 1 : i64, tpu.core_type = #tpu.core_type<tc>} {
    %c0 = arith.constant 0 : index
    %c0_0 = arith.constant 0 : index
    %0 = vector.load %arg2[%c0, %c0_0] : memref<32x128xf32, #tpu.memory_space<vmem>>, vector<32x128xf32>
    %c0_1 = arith.constant 0 : index
    %c0_2 = arith.constant 0 : index
    %1 = vector.load %arg0[%c0_1, %c0_2] : memref<128x128xf32, #tpu.memory_space<vmem>>, vector<128x128xf32>
    %cst = arith.constant dense<0.000000e+00> : vector<32x128xf32>
    %2 = tpu.matmul %0, %1, %cst {dimension_numbers = #tpu.dot_dimension_numbers<[1], [0], [0], [1], [0, 0, 1, 1], [], []>} : vector<32x128xf32>, vector<128x128xf32>, vector<32x128xf32> -> vector<32x128xf32>
    %cst_3 = arith.constant 0.000000e+00 : f32
    %3 = vector.broadcast %cst_3 : f32 to vector<32x128xf32>
    %4 = arith.maximumf %2, %3 : vector<32x128xf32>
    %5 = arith.mulf %4, %4 : vector<32x128xf32>
    %cst_4 = arith.constant dense<0.000000e+00> : vector<128xf32>
    %6 = vector.multi_reduction <add>, %5, %cst_4 [0] : vector<32x128xf32> to vector<128xf32>
    %7 = vector.shape_cast %6 : vector<128xf32> to vector<1x128xf32>
    %cst_5 = arith.constant 1.000000e-24 : f32
    %8 = vector.broadcast %cst_5 : f32 to vector<1x128xf32>
    %9 = arith.maximumf %7, %8 : vector<1x128xf32>
    %10 = math.rsqrt %9 : vector<1x128xf32>
    %11 = vector.broadcast %10 : vector<1x128xf32> to vector<32x128xf32>
    %12 = arith.mulf %4, %11 : vector<32x128xf32>
    %c0_6 = arith.constant 0 : index
    %c0_7 = arith.constant 0 : index
    %13 = vector.load %arg11[%c0_6, %c0_7] : memref<32x896xf32, #tpu.memory_space<vmem>>, vector<32x128xf32>
    tpu.vector_store %arg11[%c0_6, %c0_7], %12 {strides = array<i32>} : memref<32x896xf32, #tpu.memory_space<vmem>>, vector<32x128xf32>,
    %c0_8 = arith.constant 0 : index
    %c0_9 = arith.constant 0 : index
    %c0_10 = arith.constant 0 : index
    %14 = vector.load %arg3[%c0_8, %c0_9, %c0_10] : memref<6x32x32xf32, #tpu.memory_space<vmem>>, vector<1x32x32xf32>
    %15 = vector.shape_cast %14 : vector<1x32x32xf32> to vector<32x32xf32>
    %cst_11 = arith.constant dense<0.000000e+00> : vector<32x128xf32>
    %16 = tpu.matmul %15, %12, %cst_11 {dimension_numbers = #tpu.dot_dimension_numbers<[1], [0], [0], [1], [0, 0, 1, 1], [], []>} : vector<32x32xf32>, vector<32x128xf32>, vector<32x128xf32> -> vector<32x128xf32>
    %c0_12 = arith.constant 0 : index
    %c0_13 = arith.constant 0 : index
    %17 = vector.load %arg1[%c0_12, %c0_13] : memref<128x128xf32, #tpu.memory_space<vmem>>, vector<128x128xf32>
    %cst_14 = arith.constant dense<0.000000e+00> : vector<32x128xf32>
    %18 = tpu.matmul %16, %17, %cst_14 {dimension_numbers = #tpu.dot_dimension_numbers<[1], [0], [0], [1], [0, 0, 1, 1], [], []>} : vector<32x128xf32>, vector<128x128xf32>, vector<32x128xf32> -> vector<32x128xf32>
    %cst_15 = arith.constant 0.000000e+00 : f32
    %19 = vector.broadcast %cst_15 : f32 to vector<32x128xf32>
    %20 = arith.maximumf %18, %19 : vector<32x128xf32>
    %21 = arith.mulf %20, %20 : vector<32x128xf32>
    %cst_16 = arith.constant dense<0.000000e+00> : vector<128xf32>
    %22 = vector.multi_reduction <add>, %21, %cst_16 [0] : vector<32x128xf32> to vector<128xf32>
    %23 = vector.shape_cast %22 : vector<128xf32> to vector<1x128xf32>
    %cst_17 = arith.constant 1.000000e-24 : f32
    %24 = vector.broadcast %cst_17 : f32 to vector<1x128xf32>
    %25 = arith.maximumf %23, %24 : vector<1x128xf32>
    %26 = math.rsqrt %25 : vector<1x128xf32>
    %27 = vector.broadcast %26 : vector<1x128xf32> to vector<32x128xf32>
    %28 = arith.mulf %20, %27 : vector<32x128xf32>
    %c0_18 = arith.constant 0 : index
    %c128 = arith.constant 128 : index
    %29 = vector.load %arg11[%c0_18, %c128] : memref<32x896xf32, #tpu.memory_space<vmem>>, vector<32x128xf32>
    tpu.vector_store %arg11[%c0_18, %c128], %28 {strides = array<i32>} : memref<32x896xf32, #tpu.memory_space<vmem>>, vector<32x128xf32>,
    %c1 = arith.constant 1 : index
    %c0_19 = arith.constant 0 : index
    %c0_20 = arith.constant 0 : index
    %30 = vector.load %arg3[%c1, %c0_19, %c0_20] : memref<6x32x32xf32, #tpu.memory_space<vmem>>, vector<1x32x32xf32>
    %31 = vector.shape_cast %30 : vector<1x32x32xf32> to vector<32x32xf32>
    %cst_21 = arith.constant dense<0.000000e+00> : vector<32x128xf32>
    %32 = tpu.matmul %31, %28, %cst_21 {dimension_numbers = #tpu.dot_dimension_numbers<[1], [0], [0], [1], [0, 0, 1, 1], [], []>} : vector<32x32xf32>, vector<32x128xf32>, vector<32x128xf32> -> vector<32x128xf32>
    %c0_22 = arith.constant 0 : index
    %c0_23 = arith.constant 0 : index
    %33 = vector.load %arg1[%c0_22, %c0_23] : memref<128x128xf32, #tpu.memory_space<vmem>>, vector<128x128xf32>
    %cst_24 = arith.constant dense<0.000000e+00> : vector<32x128xf32>
    %34 = tpu.matmul %32, %33, %cst_24 {dimension_numbers = #tpu.dot_dimension_numbers<[1], [0], [0], [1], [0, 0, 1, 1], [], []>} : vector<32x128xf32>, vector<128x128xf32>, vector<32x128xf32> -> vector<32x128xf32>
    %cst_25 = arith.constant 0.000000e+00 : f32
    %35 = vector.broadcast %cst_25 : f32 to vector<32x128xf32>
    %36 = arith.maximumf %34, %35 : vector<32x128xf32>
    %37 = arith.mulf %36, %36 : vector<32x128xf32>
    %cst_26 = arith.constant dense<0.000000e+00> : vector<128xf32>
    %38 = vector.multi_reduction <add>, %37, %cst_26 [0] : vector<32x128xf32> to vector<128xf32>
    %39 = vector.shape_cast %38 : vector<128xf32> to vector<1x128xf32>
    %cst_27 = arith.constant 1.000000e-24 : f32
    %40 = vector.broadcast %cst_27 : f32 to vector<1x128xf32>
    %41 = arith.maximumf %39, %40 : vector<1x128xf32>
    %42 = math.rsqrt %41 : vector<1x128xf32>
    %43 = vector.broadcast %42 : vector<1x128xf32> to vector<32x128xf32>
    %44 = arith.mulf %36, %43 : vector<32x128xf32>
    %c0_28 = arith.constant 0 : index
    %c256 = arith.constant 256 : index
    %45 = vector.load %arg11[%c0_28, %c256] : memref<32x896xf32, #tpu.memory_space<vmem>>, vector<32x128xf32>
    tpu.vector_store %arg11[%c0_28, %c256], %44 {strides = array<i32>} : memref<32x896xf32, #tpu.memory_space<vmem>>, vector<32x128xf32>,
    %c2 = arith.constant 2 : index
    %c0_29 = arith.constant 0 : index
    %c0_30 = arith.constant 0 : index
    %46 = vector.load %arg3[%c2, %c0_29, %c0_30] : memref<6x32x32xf32, #tpu.memory_space<vmem>>, vector<1x32x32xf32>
    %47 = vector.shape_cast %46 : vector<1x32x32xf32> to vector<32x32xf32>
    %cst_31 = arith.constant dense<0.000000e+00> : vector<32x128xf32>
    %48 = tpu.matmul %47, %44, %cst_31 {dimension_numbers = #tpu.dot_dimension_numbers<[1], [0], [0], [1], [0, 0, 1, 1], [], []>} : vector<32x32xf32>, vector<32x128xf32>, vector<32x128xf32> -> vector<32x128xf32>
    %c0_32 = arith.constant 0 : index
    %c0_33 = arith.constant 0 : index
    %49 = vector.load %arg1[%c0_32, %c0_33] : memref<128x128xf32, #tpu.memory_space<vmem>>, vector<128x128xf32>
    %cst_34 = arith.constant dense<0.000000e+00> : vector<32x128xf32>
    %50 = tpu.matmul %48, %49, %cst_34 {dimension_numbers = #tpu.dot_dimension_numbers<[1], [0], [0], [1], [0, 0, 1, 1], [], []>} : vector<32x128xf32>, vector<128x128xf32>, vector<32x128xf32> -> vector<32x128xf32>
    %cst_35 = arith.constant 0.000000e+00 : f32
    %51 = vector.broadcast %cst_35 : f32 to vector<32x128xf32>
    %52 = arith.maximumf %50, %51 : vector<32x128xf32>
    %53 = arith.mulf %52, %52 : vector<32x128xf32>
    %cst_36 = arith.constant dense<0.000000e+00> : vector<128xf32>
    %54 = vector.multi_reduction <add>, %53, %cst_36 [0] : vector<32x128xf32> to vector<128xf32>
    %55 = vector.shape_cast %54 : vector<128xf32> to vector<1x128xf32>
    %cst_37 = arith.constant 1.000000e-24 : f32
    %56 = vector.broadcast %cst_37 : f32 to vector<1x128xf32>
    %57 = arith.maximumf %55, %56 : vector<1x128xf32>
    %58 = math.rsqrt %57 : vector<1x128xf32>
    %59 = vector.broadcast %58 : vector<1x128xf32> to vector<32x128xf32>
    %60 = arith.mulf %52, %59 : vector<32x128xf32>
    %c0_38 = arith.constant 0 : index
    %c384 = arith.constant 384 : index
    %61 = vector.load %arg11[%c0_38, %c384] : memref<32x896xf32, #tpu.memory_space<vmem>>, vector<32x128xf32>
    tpu.vector_store %arg11[%c0_38, %c384], %60 {strides = array<i32>} : memref<32x896xf32, #tpu.memory_space<vmem>>, vector<32x128xf32>,
    %c3 = arith.constant 3 : index
    %c0_39 = arith.constant 0 : index
    %c0_40 = arith.constant 0 : index
    %62 = vector.load %arg3[%c3, %c0_39, %c0_40] : memref<6x32x32xf32, #tpu.memory_space<vmem>>, vector<1x32x32xf32>
    %63 = vector.shape_cast %62 : vector<1x32x32xf32> to vector<32x32xf32>
    %cst_41 = arith.constant dense<0.000000e+00> : vector<32x128xf32>
    %64 = tpu.matmul %63, %60, %cst_41 {dimension_numbers = #tpu.dot_dimension_numbers<[1], [0], [0], [1], [0, 0, 1, 1], [], []>} : vector<32x32xf32>, vector<32x128xf32>, vector<32x128xf32> -> vector<32x128xf32>
    %c0_42 = arith.constant 0 : index
    %c0_43 = arith.constant 0 : index
    %65 = vector.load %arg1[%c0_42, %c0_43] : memref<128x128xf32, #tpu.memory_space<vmem>>, vector<128x128xf32>
    %cst_44 = arith.constant dense<0.000000e+00> : vector<32x128xf32>
    %66 = tpu.matmul %64, %65, %cst_44 {dimension_numbers = #tpu.dot_dimension_numbers<[1], [0], [0], [1], [0, 0, 1, 1], [], []>} : vector<32x128xf32>, vector<128x128xf32>, vector<32x128xf32> -> vector<32x128xf32>
    %cst_45 = arith.constant 0.000000e+00 : f32
    %67 = vector.broadcast %cst_45 : f32 to vector<32x128xf32>
    %68 = arith.maximumf %66, %67 : vector<32x128xf32>
    %69 = arith.mulf %68, %68 : vector<32x128xf32>
    %cst_46 = arith.constant dense<0.000000e+00> : vector<128xf32>
    %70 = vector.multi_reduction <add>, %69, %cst_46 [0] : vector<32x128xf32> to vector<128xf32>
    %71 = vector.shape_cast %70 : vector<128xf32> to vector<1x128xf32>
    %cst_47 = arith.constant 1.000000e-24 : f32
    %72 = vector.broadcast %cst_47 : f32 to vector<1x128xf32>
    %73 = arith.maximumf %71, %72 : vector<1x128xf32>
    %74 = math.rsqrt %73 : vector<1x128xf32>
    %75 = vector.broadcast %74 : vector<1x128xf32> to vector<32x128xf32>
    %76 = arith.mulf %68, %75 : vector<32x128xf32>
    %c0_48 = arith.constant 0 : index
    %c512 = arith.constant 512 : index
    %77 = vector.load %arg11[%c0_48, %c512] : memref<32x896xf32, #tpu.memory_space<vmem>>, vector<32x128xf32>
    tpu.vector_store %arg11[%c0_48, %c512], %76 {strides = array<i32>} : memref<32x896xf32, #tpu.memory_space<vmem>>, vector<32x128xf32>,
    %c4 = arith.constant 4 : index
    %c0_49 = arith.constant 0 : index
    %c0_50 = arith.constant 0 : index
    %78 = vector.load %arg3[%c4, %c0_49, %c0_50] : memref<6x32x32xf32, #tpu.memory_space<vmem>>, vector<1x32x32xf32>
    %79 = vector.shape_cast %78 : vector<1x32x32xf32> to vector<32x32xf32>
    %cst_51 = arith.constant dense<0.000000e+00> : vector<32x128xf32>
    %80 = tpu.matmul %79, %76, %cst_51 {dimension_numbers = #tpu.dot_dimension_numbers<[1], [0], [0], [1], [0, 0, 1, 1], [], []>} : vector<32x32xf32>, vector<32x128xf32>, vector<32x128xf32> -> vector<32x128xf32>
    %c0_52 = arith.constant 0 : index
    %c0_53 = arith.constant 0 : index
    %81 = vector.load %arg1[%c0_52, %c0_53] : memref<128x128xf32, #tpu.memory_space<vmem>>, vector<128x128xf32>
    %cst_54 = arith.constant dense<0.000000e+00> : vector<32x128xf32>
    %82 = tpu.matmul %80, %81, %cst_54 {dimension_numbers = #tpu.dot_dimension_numbers<[1], [0], [0], [1], [0, 0, 1, 1], [], []>} : vector<32x128xf32>, vector<128x128xf32>, vector<32x128xf32> -> vector<32x128xf32>
    %cst_55 = arith.constant 0.000000e+00 : f32
    %83 = vector.broadcast %cst_55 : f32 to vector<32x128xf32>
    %84 = arith.maximumf %82, %83 : vector<32x128xf32>
    %85 = arith.mulf %84, %84 : vector<32x128xf32>
    %cst_56 = arith.constant dense<0.000000e+00> : vector<128xf32>
    %86 = vector.multi_reduction <add>, %85, %cst_56 [0] : vector<32x128xf32> to vector<128xf32>
    %87 = vector.shape_cast %86 : vector<128xf32> to vector<1x128xf32>
    %cst_57 = arith.constant 1.000000e-24 : f32
    %88 = vector.broadcast %cst_57 : f32 to vector<1x128xf32>
    %89 = arith.maximumf %87, %88 : vector<1x128xf32>
    %90 = math.rsqrt %89 : vector<1x128xf32>
    %91 = vector.broadcast %90 : vector<1x128xf32> to vector<32x128xf32>
    %92 = arith.mulf %84, %91 : vector<32x128xf32>
    %c0_58 = arith.constant 0 : index
    %c640 = arith.constant 640 : index
    %93 = vector.load %arg11[%c0_58, %c640] : memref<32x896xf32, #tpu.memory_space<vmem>>, vector<32x128xf32>
    tpu.vector_store %arg11[%c0_58, %c640], %92 {strides = array<i32>} : memref<32x896xf32, #tpu.memory_space<vmem>>, vector<32x128xf32>,
    %c5 = arith.constant 5 : index
    %c0_59 = arith.constant 0 : index
    %c0_60 = arith.constant 0 : index
    %94 = vector.load %arg3[%c5, %c0_59, %c0_60] : memref<6x32x32xf32, #tpu.memory_space<vmem>>, vector<1x32x32xf32>
    %95 = vector.shape_cast %94 : vector<1x32x32xf32> to vector<32x32xf32>
    %cst_61 = arith.constant dense<0.000000e+00> : vector<32x128xf32>
    %96 = tpu.matmul %95, %92, %cst_61 {dimension_numbers = #tpu.dot_dimension_numbers<[1], [0], [0], [1], [0, 0, 1, 1], [], []>} : vector<32x32xf32>, vector<32x128xf32>, vector<32x128xf32> -> vector<32x128xf32>
    %c0_62 = arith.constant 0 : index
    %c0_63 = arith.constant 0 : index
    %97 = vector.load %arg1[%c0_62, %c0_63] : memref<128x128xf32, #tpu.memory_space<vmem>>, vector<128x128xf32>
    %cst_64 = arith.constant dense<0.000000e+00> : vector<32x128xf32>
    %98 = tpu.matmul %96, %97, %cst_64 {dimension_numbers = #tpu.dot_dimension_numbers<[1], [0], [0], [1], [0, 0, 1, 1], [], []>} : vector<32x128xf32>, vector<128x128xf32>, vector<32x128xf32> -> vector<32x128xf32>
    %cst_65 = arith.constant 0.000000e+00 : f32
    %99 = vector.broadcast %cst_65 : f32 to vector<32x128xf32>
    %100 = arith.maximumf %98, %99 : vector<32x128xf32>
    %c0_66 = arith.constant 0 : index
    %c768 = arith.constant 768 : index
    %101 = vector.load %arg11[%c0_66, %c768] : memref<32x896xf32, #tpu.memory_space<vmem>>, vector<32x128xf32>
    tpu.vector_store %arg11[%c0_66, %c768], %100 {strides = array<i32>} : memref<32x896xf32, #tpu.memory_space<vmem>>, vector<32x128xf32>,
    %c0_67 = arith.constant 0 : index
    %c0_68 = arith.constant 0 : index
    %102 = vector.load %arg4[%c0_67, %c0_68] : memref<64x32xf32, #tpu.memory_space<vmem>>, vector<64x32xf32>
    %c0_69 = arith.constant 0 : index
    %c0_70 = arith.constant 0 : index
    %103 = vector.load %arg11[%c0_69, %c0_70] : memref<32x896xf32, #tpu.memory_space<vmem>>, vector<32x896xf32>
    %cst_71 = arith.constant dense<0.000000e+00> : vector<64x896xf32>
    %104 = tpu.matmul %102, %103, %cst_71 {dimension_numbers = #tpu.dot_dimension_numbers<[1], [0], [0], [1], [0, 0, 1, 1], [], []>} : vector<64x32xf32>, vector<32x896xf32>, vector<64x896xf32> -> vector<64x896xf32>
    %c0_72 = arith.constant 0 : index
    %c0_73 = arith.constant 0 : index
    %105 = vector.load %arg5[%c0_72, %c0_73] : memref<64x1xf32, #tpu.memory_space<vmem>>, vector<64x1xf32>
    %106 = vector.broadcast %105 : vector<64x1xf32> to vector<64x896xf32>
    %107 = arith.addf %104, %106 : vector<64x896xf32>
    %cst_74 = arith.constant 0.000000e+00 : f32
    %108 = vector.broadcast %cst_74 : f32 to vector<64x896xf32>
    %109 = arith.maximumf %107, %108 : vector<64x896xf32>
    %c0_75 = arith.constant 0 : index
    %c0_76 = arith.constant 0 : index
    %110 = vector.load %arg6[%c0_75, %c0_76] : memref<64x64xf32, #tpu.memory_space<vmem>>, vector<64x64xf32>
    %cst_77 = arith.constant dense<0.000000e+00> : vector<64x896xf32>
    %111 = tpu.matmul %110, %109, %cst_77 {dimension_numbers = #tpu.dot_dimension_numbers<[1], [0], [0], [1], [0, 0, 1, 1], [], []>} : vector<64x64xf32>, vector<64x896xf32>, vector<64x896xf32> -> vector<64x896xf32>
    %c0_78 = arith.constant 0 : index
    %c0_79 = arith.constant 0 : index
    %112 = vector.load %arg7[%c0_78, %c0_79] : memref<64x1xf32, #tpu.memory_space<vmem>>, vector<64x1xf32>
    %113 = vector.broadcast %112 : vector<64x1xf32> to vector<64x896xf32>
    %114 = arith.addf %111, %113 : vector<64x896xf32>
    %cst_80 = arith.constant 0.000000e+00 : f32
    %115 = vector.broadcast %cst_80 : f32 to vector<64x896xf32>
    %116 = arith.maximumf %114, %115 : vector<64x896xf32>
    %c0_81 = arith.constant 0 : index
    %c0_82 = arith.constant 0 : index
    %117 = vector.load %arg8[%c0_81, %c0_82] : memref<64x1xf32, #tpu.memory_space<vmem>>, vector<64x1xf32>
    %118 = vector.broadcast %117 : vector<64x1xf32> to vector<64x896xf32>
    %119 = arith.mulf %116, %118 : vector<64x896xf32>
    %cst_83 = arith.constant dense<0.000000e+00> : vector<896xf32>
    %120 = vector.multi_reduction <add>, %119, %cst_83 [0] : vector<64x896xf32> to vector<896xf32>
    %121 = vector.shape_cast %120 : vector<896xf32> to vector<1x896xf32>
    %c0_84 = arith.constant 0 : index
    %122 = memref.load %arg9[%c0_84] : memref<1xf32, #tpu.memory_space<smem>>
    %123 = vector.broadcast %122 : f32 to vector<1x896xf32>
    %124 = arith.addf %121, %123 : vector<1x896xf32>
    %125 = vector.extract_strided_slice %124 {offsets = [0, 0], sizes = [1, 128], strides = [1, 1]} : vector<1x896xf32> to vector<1x128xf32>
    %126 = vector.extract_strided_slice %124 {offsets = [0, 128], sizes = [1, 128], strides = [1, 1]} : vector<1x896xf32> to vector<1x128xf32>
    %127 = arith.addf %125, %126 : vector<1x128xf32>
    %128 = vector.extract_strided_slice %124 {offsets = [0, 256], sizes = [1, 128], strides = [1, 1]} : vector<1x896xf32> to vector<1x128xf32>
    %129 = arith.addf %127, %128 : vector<1x128xf32>
    %130 = vector.extract_strided_slice %124 {offsets = [0, 384], sizes = [1, 128], strides = [1, 1]} : vector<1x896xf32> to vector<1x128xf32>
    %131 = arith.addf %129, %130 : vector<1x128xf32>
    %132 = vector.extract_strided_slice %124 {offsets = [0, 512], sizes = [1, 128], strides = [1, 1]} : vector<1x896xf32> to vector<1x128xf32>
    %133 = arith.addf %131, %132 : vector<1x128xf32>
    %134 = vector.extract_strided_slice %124 {offsets = [0, 640], sizes = [1, 128], strides = [1, 1]} : vector<1x896xf32> to vector<1x128xf32>
    %135 = arith.addf %133, %134 : vector<1x128xf32>
    %136 = vector.extract_strided_slice %124 {offsets = [0, 768], sizes = [1, 128], strides = [1, 1]} : vector<1x896xf32> to vector<1x128xf32>
    %137 = arith.addf %135, %136 : vector<1x128xf32>
    %c0_85 = arith.constant 0 : index
    %c0_86 = arith.constant 0 : index
    %138 = vector.load %arg10[%c0_85, %c0_86] : memref<1x128xf32, #tpu.memory_space<vmem>>, vector<1x128xf32>
    tpu.vector_store %arg10[%c0_85, %c0_86], %137 {strides = array<i32>} : memref<1x128xf32, #tpu.memory_space<vmem>>, vector<1x128xf32>,
    return
  }
}

</mosaic_0001>

<bundles_post_ra>
// kernel: tpu_custom_call.1
= control target key start
LH: loop header
LB: loop body
LE: loop exit
PB: predicated region body
PF: predicated region fallthrough
CT: control target
= control target key end

     0   :  { %16 = vsyncpa [#allocation5], 0  ;;  %s5122_s0 = inlined_call_operand.hbm [shape: f32[128,128], index: 0, kind: input, shape index: {}]   ;;  %s5123_s1 = inlined_call_operand.hbm [shape: f32[128,128], index: 1, kind: input, shape index: {}]   ;;  %s5124_s2 = inlined_call_operand.vmem [shape: f32[32,128], index: 2, kind: input, shape index: {}]   ;;  %s5125_s3 = inlined_call_operand.vmem [shape: f32[6,32,32], index: 3, kind: input, shape index: {}]   ;;  %s5126_s4 = inlined_call_operand.vmem [shape: f32[64,32], index: 4, kind: input, shape index: {}]   ;;  %s5127_s5 = inlined_call_operand.vmem [shape: f32[64,1], index: 5, kind: input, shape index: {}]   ;;  %s5128_s6 = inlined_call_operand.vmem [shape: f32[64,64], index: 6, kind: input, shape index: {}]   ;;  %s5129_s7 = inlined_call_operand.vmem [shape: f32[64,1], index: 7, kind: input, shape index: {}]   ;;  %s5130_s8 = inlined_call_operand.vmem [shape: f32[64,1], index: 8, kind: input, shape index: {}]   ;;  %s5131_s9 = inlined_call_operand.<no memory space> [shape: f32[1], index: 9, kind: input, shape index: {}]   ;;  %s5132_s10 = inlined_call_operand.hbm [shape: f32[1,128], index: 10, kind: output, shape index: {}]  }
   0x1   :  { %17 = vsyncpa [#allocation8], 0 }
   0x2   :  { %18 = vsyncpa [#allocation6], 0  ;;  %s4157_s13 = smov [#allocation4]   ;;  %s4085_s17 = scalar_lea.hbm %s5122_s0, 2048 }
   0x3   :  { %s24_s14 = sshll.u32 %s4157_s13, 4  ;;  %p4086_p0 = scmp.ne.s32.totalorder %s5122_s0, %s4085_s17  ;;  %s25_s14 = int_to_ptr.vmem [resolvable:$true] %s24_s14 }
   0x4   :  { %p4089_p1 = scmp.lt.u32.totalorder %s4085_s17, %s5122_s0 }
   0x6   :  { %p4091_p2 = pnand %p4089_p1, %p4086_p0 }
   0x8   :  { %4094 = shalt.err (!%p4091_p2)
}
   0x9   :  { %s4095_s22 = scalar_lea.vmem %s25_s14, 2048  ;;  %p4100_p4 = scmp.lt.s32.totalorder %s25_s14, %s25_s14 }
   0xa   :  { %p4096_p3 = scmp.ne.s32.totalorder %s25_s14, %s4095_s22  ;;  %p4101_p5 = scmp.lt.s32.totalorder %s4095_s22, %s4095_s22 }
   0xc   :  { %p4102_p6 = por %p4101_p5, %p4100_p4 }
   0xe   :  { %p4103_p7 = pnand %p4102_p6, %p4096_p3 }
  0x10   :  { %4106 = shalt.err (!%p4103_p7)
}
  0x11   :  { %s4158_s23 = smov 128   ;;  %s4159_s24 = smov 8  }
  0x12   :  { %30 = dma.hbm_to_vmem [thread:$0]  %s5122_s0, 2048, %s25_s14, [#allocation5], %s4158_s23, %s4158_s23, %s4159_s24  }
  0x13   :  { %s4160_s27 = smov [#allocation7]   ;;  %s4107_s11 = scalar_lea.hbm %s5123_s1, 2048 }
  0x14   :  { %s36_s28 = sshll.u32 %s4160_s27, 4  ;;  %p4108_p8 = scmp.ne.s32.totalorder %s5123_s1, %s4107_s11  ;;  %s37_s28 = int_to_ptr.vmem [resolvable:$true] %s36_s28 }
  0x15   :  { %p4111_p9 = scmp.lt.u32.totalorder %s4107_s11, %s5123_s1 }
  0x17   :  { %p4113_p10 = pnand %p4111_p9, %p4108_p8 }
  0x19   :  { %4116 = shalt.err (!%p4113_p10)
}
  0x1a   :  { %s4117_s17 = scalar_lea.vmem %s37_s28, 2048  ;;  %p4122_p12 = scmp.lt.s32.totalorder %s37_s28, %s37_s28 }
  0x1b   :  { %p4118_p11 = scmp.ne.s32.totalorder %s37_s28, %s4117_s17  ;;  %p4123_p13 = scmp.lt.s32.totalorder %s4117_s17, %s4117_s17 }
  0x1d   :  { %p4124_p0 = por %p4123_p13, %p4122_p12 }
  0x1f   :  { %p4125_p1 = pnand %p4124_p0, %p4118_p11 }
  0x21   :  { %4128 = shalt.err (!%p4125_p1)
}
  0x22   :  { %42 = dma.hbm_to_vmem [thread:$0]  %s5123_s1, 2048, %s37_s28, [#allocation8], %s4158_s23, %s4158_s23, %s4159_s24  }
  0x23   :  { %4151 = dma.done.wait [#allocation5], 2048  }
  0x24   :  { %4152 = vsyncadd [#allocation5], 4294965248 }
  0x25   :  { %4153 = dma.done.wait [#allocation8], 2048  }
  0x26   :  { %4154 = vsyncadd [#allocation8], 4294965248  ;;  %v69_v0 = vld [vmem:[#allocation4] sm:$0xff]  ;;  %v70_v1 = vld [vmem:[#allocation4 + $0x8] sm:$0xff]  ;;  %vm201_vm0 = vcmask 261120   ;;  %vm2222_vm1 = vcmask 523264  }
  0x27   :  { %v71_v2 = vld [vmem:[#allocation4 + $0x10] sm:$0xff]  ;;  %v3696_v3 = vpack.c.bf16 %v70_v1, %v69_v0  ;;  %v72_v4 = vld [vmem:[#allocation4 + $0x18] sm:$0xff]  ;;  %v73_v6 = vld [vmem:[#allocation4 + $0x20] sm:$0xff] }
  0x28   :  { %v3700_v5 = vpack.c.bf16 %v72_v4, %v71_v2  ;;  %v74_v7 = vld [vmem:[#allocation4 + $0x28] sm:$0xff]  ;;  %v65_v9 = vld [vmem:[%s5124_s2] sm:$0xff]  ;;  %v75_v10 = vld [vmem:[#allocation4 + $0x30] sm:$0xff] }
  0x29   :  { %3697 = vmatprep.subr.bf16.mxu0 %v3696_v3  ;;  %v3704_v8 = vpack.c.bf16 %v74_v7, %v73_v6  ;;  %v76_v11 = vld [vmem:[#allocation4 + $0x38] sm:$0xff]  ;;  %3330 = vmatprep.mubr.f32.mxu0 %v65_v9  ;;  %v77_v13 = vld [vmem:[#allocation4 + $0x40] sm:$0xff]  ;;  %v78_v14 = vld [vmem:[#allocation4 + $0x48] sm:$0xff] }
  0x2a   :  { %3699 = vmatpush3.bf16.msra.mxu0 %v3696_v3  ;;  %v3708_v12 = vpack.c.bf16 %v76_v11, %v75_v10  ;;  %v3712_v15 = vpack.c.bf16 %v78_v14, %v77_v13  ;;  %v79_v16 = vld [vmem:[#allocation4 + $0x50] sm:$0xff]  ;;  %v80_v17 = vld [vmem:[#allocation4 + $0x58] sm:$0xff]  ;;  %v81_v19 = vld [vmem:[#allocation4 + $0x60] sm:$0xff] }
  0x2b   :  { %3701 = vmatprep.subr.bf16.mxu0 %v3700_v5  ;;  %v3716_v18 = vpack.c.bf16 %v80_v17, %v79_v16  ;;  %v82_v20 = vld [vmem:[#allocation4 + $0x68] sm:$0xff]  ;;  %v83_v22 = vld [vmem:[#allocation4 + $0x70] sm:$0xff]  ;;  %v84_v23 = vld [vmem:[#allocation4 + $0x78] sm:$0xff] }
  0x2c   :  { %v3720_v21 = vpack.c.bf16 %v82_v20, %v81_v19  ;;  %v3724_v24 = vpack.c.bf16 %v84_v23, %v83_v22  ;;  %v66_v25 = vld [vmem:[%s5124_s2 + $0x8] sm:$0xff]  ;;  %v67_v26 = vld [vmem:[%s5124_s2 + $0x10] sm:$0xff]  ;;  %v68_v27 = vld [vmem:[%s5124_s2 + $0x18] sm:$0xff] }
  0x2d   :  { %v197_v28 = vld [vmem:[%s5125_s3] sm:$0xff]  ;;  %v300_v59 = vld [vmem:[#allocation7 + $0x8] sm:$0xff]  ;;  %v301_v61 = vld [vmem:[#allocation7 + $0x10] sm:$0xff] }
  0x2e   :  { %3703 = vmatpush3.bf16.msra.mxu0 %v3700_v5  ;;  %3344 = vmatprep.mubr.msk.f32.mxu1 %vm201_vm0, %v197_v28  ;;  %v299_v58 = vld [vmem:[#allocation7] sm:$0xff]  ;;  %v302_v62 = vld [vmem:[#allocation7 + $0x18] sm:$0xff]  ;;  %v198_v63 = vld [vmem:[%s5125_s3 + $0x8] sm:$0xff] }
  0x2f   :  { %3705 = vmatprep.subr.bf16.mxu0 %v3704_v8  ;;  %v4266_v60 = vpack.c.bf16 %v300_v59, %v299_v58  ;;  %v199_v0 = vld [vmem:[%s5125_s3 + $0x10] sm:$0xff]  ;;  %v4276_v1 = vpack.c.bf16 %v302_v62, %v301_v61  ;;  %v303_v2 = vld [vmem:[#allocation7 + $0x20] sm:$0xff]  ;;  %v304_v3 = vld [vmem:[#allocation7 + $0x28] sm:$0xff] }
  0x30   :  { %v200_v4 = vld [vmem:[%s5125_s3 + $0x18] sm:$0xff]  ;;  %v4285_v5 = vpack.c.bf16 %v304_v3, %v303_v2  ;;  %v305_v6 = vld [vmem:[#allocation7 + $0x30] sm:$0xff]  ;;  %v307_v9 = vld [vmem:[#allocation7 + $0x40] sm:$0xff] }
  0x31   :  { %v306_v7 = vld [vmem:[#allocation7 + $0x38] sm:$0xff]  ;;  %v308_v10 = vld [vmem:[#allocation7 + $0x48] sm:$0xff]  ;;  %v2980_v58 = vld [vmem:[%s5125_s3 + $0x30] sm:$0xff] }
  0x32   :  { %3707 = vmatpush3.bf16.msra.mxu0 %v3704_v8  ;;  %v4290_v8 = vpack.c.bf16 %v306_v7, %v305_v6  ;;  %v4294_v11 = vpack.c.bf16 %v308_v10, %v307_v9  ;;  %v310_v13 = vld [vmem:[#allocation7 + $0x58] sm:$0xff]  ;;  %v312_v16 = vld [vmem:[#allocation7 + $0x68] sm:$0xff]  ;;  %v2986_v2 = vld [vmem:[%s5125_s3 + $0x40] sm:$0xff] }
  0x33   :  { %3709 = vmatprep.subr.bf16.mxu0 %v3708_v12  ;;  %v314_v19 = vld [vmem:[#allocation7 + $0x78] sm:$0xff] }
  0x34   :  { %v2981_v59 = vld [vmem:[%s5125_s3 + $0x38] sm:$0xff] }
  0x36   :  { %3711 = vmatpush3.bf16.msra.mxu0 %v3708_v12  ;;  %v309_v12 = vld [vmem:[#allocation7 + $0x50] sm:$0xff] }
  0x37   :  { %3713 = vmatprep.subr.bf16.mxu0 %v3712_v15  ;;  %v4298_v14 = vpack.c.bf16 %v310_v13, %v309_v12 }
  0x3a   :  { %3715 = vmatpush3.bf16.msra.mxu0 %v3712_v15  ;;  %v311_v15 = vld [vmem:[#allocation7 + $0x60] sm:$0xff] }
  0x3b   :  { %3717 = vmatprep.subr.bf16.mxu0 %v3716_v18  ;;  %v4302_v17 = vpack.c.bf16 %v312_v16, %v311_v15 }
  0x3e   :  { %3719 = vmatpush3.bf16.msra.mxu0 %v3716_v18  ;;  %v313_v18 = vld [vmem:[#allocation7 + $0x70] sm:$0xff] }
  0x3f   :  { %3721 = vmatprep.subr.bf16.mxu0 %v3720_v21  ;;  %v4306_v20 = vpack.c.bf16 %v314_v19, %v313_v18 }
  0x42   :  { %3723 = vmatpush3.bf16.msra.mxu0 %v3720_v21 }
  0x43   :  { %3725 = vmatprep.subr.bf16.mxu0 %v3724_v24 }
  0x46   :  { %3727 = vmatpush3.bf16.msra.mxu0 %v3724_v24 }
  0x49   :  { %3331 = vmatmul.mubr.f32.vlgmr.msra.gmra.mrb[0].mxu0 %v66_v25  ;;  %v2978_v25 = vld [vmem:[%s5125_s3 + $0x20] sm:$0xff] }
  0x4a   :  { %3333 = vmatprep.mubr.f32.mxu0 %v67_v26 }
  0x4d   :  { %3334 = vmatmul.mubr.f32.gmra.mrb[2].mxu0 %v68_v27 }
  0x4e   :  { %3396 = vmatprep.mubr.msk.f32.mxu0 %vm201_vm0, %v2978_v25 }
 0x11c   :  { %v3332_v29 = vpop.f32.mrb[0].mxu0 }
 0x11d   :  { %v171_v30 = vmax.f32 %v3332_v29, 0.0  ;;  %v151_v31 = vpop.f32.mrb[1].mxu0 }
 0x11e   :  { %v170_v32 = vmax.f32 %v151_v31, 0.0 }
 0x11f   :  { %v175_v33 = vmul.f32 %v171_v30, %v171_v30 }
 0x120   :  { %v174_v34 = vmul.f32 %v170_v32, %v170_v32  ;;  %v3335_v35 = vpop.f32.mrb[2].mxu0 }
 0x121   :  { %v161_v36 = vpop.f32.mrb[3].mxu0  ;;  %v173_v38 = vmax.f32 %v3335_v35, 0.0 }
 0x122   :  { %v178_v37 = vadd.f32 %v175_v33, %v174_v34  ;;  %v172_v39 = vmax.f32 %v161_v36, 0.0 }
 0x123   :  { %v177_v41 = vmul.f32 %v173_v38, %v173_v38 }
 0x124   :  { %v176_v40 = vmul.f32 %v172_v39, %v172_v39 }
 0x126   :  { %v179_v42 = vadd.f32 %v178_v37, %v176_v40 }
 0x128   :  { %v180_v43 = vadd.f32 %v179_v42, %v177_v41 }
 0x12a   :  { %v181_v44 = vrot.slane %v180_v43, 4 }
 0x12c   :  { %v182_v45 = vadd.f32 %v181_v44, %v180_v43 }
 0x12e   :  { %v183_v46 = vrot.slane %v182_v45, 2 }
 0x130   :  { %v184_v47 = vadd.f32 %v183_v46, %v182_v45 }
 0x132   :  { %v185_v48 = vrot.slane %v184_v47, 1 }
 0x134   :  { %v186_v49 = vadd.f32 %v185_v48, %v184_v47 }
 0x136   :  { %v187_v50 = vmax.f32 %v186_v49, 1e-24 }
 0x138   :  { %4073 = vrsqrt.f32 %v187_v50 }
 0x142   :  { %v4074_v51 = vpop.eup %4073 }
 0x143   :  { %v191_v52 = vmul.f32 %v4074_v51, %v172_v39  ;;  %v189_v53 = vmul.f32 %v4074_v51, %v170_v32  ;;  %v190_v54 = vmul.f32 %v4074_v51, %v171_v30  ;;  %v192_v55 = vmul.f32 %v4074_v51, %v173_v38 }
 0x145   :  { %v4259_v56 = vpack.c.bf16 %v190_v54, %v189_v53  ;;  %v4261_v57 = vpack.c.bf16 %v192_v55, %v191_v52  ;;  %v2979_v55 = vld [vmem:[%s5125_s3 + $0x28] sm:$0xff] }
 0x147   :  { %3729 = vmatprep.subr.bf16.mxu1 %v4259_v56 }
 0x148   :  { %3731 = vmatpush3.bf16.msra.mxu1 %v4259_v56 }
 0x149   :  { %3733 = vmatprep.subr.bf16.mxu1 %v4261_v57 }
 0x14c   :  { %3735 = vmatpush3.bf16.msra.mxu1 %v4261_v57 }
 0x14d   :  { %3737 = vmatprep.subr.bf16.mxu1 %v4266_v60 }
 0x14f   :  { %3345 = vmatmul.mubr.msk.f32.vlgmr.msra.gmra.mrb[0].mxu1 %vm201_vm0, %v198_v63 }
 0x150   :  { %3347 = vmatprep.mubr.msk.f32.mxu1 %vm201_vm0, %v199_v0  ;;  %3739 = vmatpush3.bf16.msra.mxu1 %v4266_v60 }
 0x151   :  { %3741 = vmatprep.subr.bf16.mxu1 %v4276_v1 }
 0x153   :  { %3348 = vmatmul.mubr.msk.f32.gmra.mrb[2].mxu1 %vm201_vm0, %v200_v4 }
 0x154   :  { %3743 = vmatpush3.bf16.msra.mxu1 %v4276_v1 }
 0x155   :  { %3745 = vmatprep.subr.bf16.mxu1 %v4285_v5 }
 0x158   :  { %3747 = vmatpush3.bf16.msra.mxu1 %v4285_v5 }
 0x159   :  { %3749 = vmatprep.subr.bf16.mxu1 %v4290_v8 }
 0x15c   :  { %3751 = vmatpush3.bf16.msra.mxu1 %v4290_v8 }
 0x15d   :  { %3753 = vmatprep.subr.bf16.mxu1 %v4294_v11 }
 0x160   :  { %3755 = vmatpush3.bf16.msra.mxu1 %v4294_v11 }
 0x161   :  { %3757 = vmatprep.subr.bf16.mxu1 %v4298_v14 }
 0x164   :  { %3759 = vmatpush3.bf16.msra.mxu1 %v4298_v14 }
 0x165   :  { %3761 = vmatprep.subr.bf16.mxu1 %v4302_v17 }
 0x168   :  { %3763 = vmatpush3.bf16.msra.mxu1 %v4302_v17 }
 0x169   :  { %3765 = vmatprep.subr.bf16.mxu1 %v4306_v20 }
 0x16c   :  { %3767 = vmatpush3.bf16.msra.mxu1 %v4306_v20 }
 0x222   :  { %v3346_v21 = vpop.f32.mrb[0].mxu1 }
 0x223   :  { %v280_v22 = vpop.f32.mrb[1].mxu1 }
 0x224   :  { %3382 = vmatprep.mubr.f32.mxu1 %v280_v22 }
 0x225   :  { %3383 = vmatmul.mubr.f32.vlgmr.msra.gmra.mrb[4].mxu1 %v3346_v21 }
 0x226   :  { %v3349_v23 = vpop.f32.mrb[2].mxu1 }
 0x227   :  { %v290_v24 = vpop.f32.mrb[3].mxu1 }
 0x228   :  { %3385 = vmatprep.mubr.f32.mxu1 %v290_v24 }
 0x229   :  { %3386 = vmatmul.mubr.f32.gmra.mrb[6].mxu1 %v3349_v23 }
 0x22a   :  { %3448 = vmatprep.mubr.msk.f32.mxu1 %vm201_vm0, %v2986_v2 }
 0x2f8   :  { %v3384_v26 = vpop.f32.mrb[4].mxu1 }
 0x2f9   :  { %v401_v27 = vmax.f32 %v3384_v26, 0.0  ;;  %v381_v28 = vpop.f32.mrb[5].mxu1 }
 0x2fa   :  { %v400_v29 = vmax.f32 %v381_v28, 0.0 }
 0x2fb   :  { %v405_v30 = vmul.f32 %v401_v27, %v401_v27 }
 0x2fc   :  { %v404_v31 = vmul.f32 %v400_v29, %v400_v29  ;;  %v3387_v32 = vpop.f32.mrb[6].mxu1 }
 0x2fd   :  { %v391_v33 = vpop.f32.mrb[7].mxu1  ;;  %v403_v35 = vmax.f32 %v3387_v32, 0.0 }
 0x2fe   :  { %v408_v34 = vadd.f32 %v405_v30, %v404_v31  ;;  %v402_v36 = vmax.f32 %v391_v33, 0.0 }
 0x2ff   :  { %v407_v38 = vmul.f32 %v403_v35, %v403_v35 }
 0x300   :  { %v406_v37 = vmul.f32 %v402_v36, %v402_v36 }
 0x302   :  { %v409_v39 = vadd.f32 %v408_v34, %v406_v37 }
 0x304   :  { %v410_v40 = vadd.f32 %v409_v39, %v407_v38  ;;  %v2987_v38 = vld [vmem:[%s5125_s3 + $0x48] sm:$0xff]  ;;  %v2988_v39 = vld [vmem:[%s5125_s3 + $0x50] sm:$0xff] }
 0x306   :  { %v411_v41 = vrot.slane %v410_v40, 4 }
 0x308   :  { %v412_v42 = vadd.f32 %v411_v41, %v410_v40  ;;  %v2989_v40 = vld [vmem:[%s5125_s3 + $0x58] sm:$0xff] }
 0x30a   :  { %v413_v43 = vrot.slane %v412_v42, 2 }
 0x30c   :  { %v414_v44 = vadd.f32 %v413_v43, %v412_v42 }
 0x30e   :  { %v415_v45 = vrot.slane %v414_v44, 1 }
 0x310   :  { %v416_v46 = vadd.f32 %v415_v45, %v414_v44  ;;  %v2994_v45 = vld [vmem:[%s5125_s3 + $0x60] sm:$0xff] }
 0x312   :  { %v417_v47 = vmax.f32 %v416_v46, 1e-24 }
 0x314   :  { %4075 = vrsqrt.f32 %v417_v47 }
 0x31e   :  { %v4076_v48 = vpop.eup %4075 }
 0x31f   :  { %v421_v49 = vmul.f32 %v4076_v48, %v402_v36  ;;  %v419_v50 = vmul.f32 %v4076_v48, %v400_v29  ;;  %v420_v51 = vmul.f32 %v4076_v48, %v401_v27  ;;  %v422_v52 = vmul.f32 %v4076_v48, %v403_v35 }
 0x321   :  { %v4315_v53 = vpack.c.bf16 %v420_v51, %v419_v50  ;;  %v4317_v54 = vpack.c.bf16 %v422_v52, %v421_v49 }
 0x323   :  { %3769 = vmatprep.subr.bf16.mxu0 %v4315_v53 }
 0x324   :  { %3771 = vmatpush3.bf16.msra.mxu0 %v4315_v53 }
 0x325   :  { %3773 = vmatprep.subr.bf16.mxu0 %v4317_v54 }
 0x328   :  { %3775 = vmatpush3.bf16.msra.mxu0 %v4317_v54 }
 0x329   :  { %3777 = vmatprep.subr.bf16.mxu0 %v4266_v60 }
 0x32b   :  { %3397 = vmatmul.mubr.msk.f32.vlgmr.msra.gmra.mrb[4].mxu0 %vm201_vm0, %v2979_v55 }
 0x32c   :  { %3399 = vmatprep.mubr.msk.f32.mxu0 %vm201_vm0, %v2980_v58  ;;  %3779 = vmatpush3.bf16.msra.mxu0 %v4266_v60 }
 0x32d   :  { %3781 = vmatprep.subr.bf16.mxu0 %v4276_v1 }
 0x32f   :  { %3400 = vmatmul.mubr.msk.f32.gmra.mrb[6].mxu0 %vm201_vm0, %v2981_v59 }
 0x330   :  { %3783 = vmatpush3.bf16.msra.mxu0 %v4276_v1 }
 0x331   :  { %3785 = vmatprep.subr.bf16.mxu0 %v4285_v5 }
 0x334   :  { %3787 = vmatpush3.bf16.msra.mxu0 %v4285_v5 }
 0x335   :  { %3789 = vmatprep.subr.bf16.mxu0 %v4290_v8 }
 0x338   :  { %3791 = vmatpush3.bf16.msra.mxu0 %v4290_v8 }
 0x339   :  { %3793 = vmatprep.subr.bf16.mxu0 %v4294_v11 }
 0x33c   :  { %3795 = vmatpush3.bf16.msra.mxu0 %v4294_v11 }
 0x33d   :  { %3797 = vmatprep.subr.bf16.mxu0 %v4298_v14 }
 0x340   :  { %3799 = vmatpush3.bf16.msra.mxu0 %v4298_v14 }
 0x341   :  { %3801 = vmatprep.subr.bf16.mxu0 %v4302_v17 }
 0x344   :  { %3803 = vmatpush3.bf16.msra.mxu0 %v4302_v17 }
 0x345   :  { %3805 = vmatprep.subr.bf16.mxu0 %v4306_v20 }
 0x348   :  { %3807 = vmatpush3.bf16.msra.mxu0 %v4306_v20 }
 0x3fe   :  { %v3398_v61 = vpop.f32.mrb[4].mxu0 }
 0x3ff   :  { %v510_v62 = vpop.f32.mrb[5].mxu0 }
 0x400   :  { %3434 = vmatprep.mubr.f32.mxu0 %v510_v62 }
 0x401   :  { %3435 = vmatmul.mubr.f32.vlgmr.msra.gmra.mrb[8].mxu0 %v3398_v61 }
 0x402   :  { %v3401_v63 = vpop.f32.mrb[6].mxu0 }
 0x403   :  { %v520_v0 = vpop.f32.mrb[7].mxu0 }
 0x404   :  { %3437 = vmatprep.mubr.f32.mxu0 %v520_v0 }
 0x405   :  { %3438 = vmatmul.mubr.f32.gmra.mrb[10].mxu0 %v3401_v63 }
 0x406   :  { %3500 = vmatprep.mubr.msk.f32.mxu0 %vm201_vm0, %v2994_v45 }
 0x4d4   :  { %v3436_v3 = vpop.f32.mrb[8].mxu0 }
 0x4d5   :  { %v631_v4 = vmax.f32 %v3436_v3, 0.0  ;;  %v611_v6 = vpop.f32.mrb[9].mxu0 }
 0x4d6   :  { %v630_v7 = vmax.f32 %v611_v6, 0.0 }
 0x4d7   :  { %v635_v9 = vmul.f32 %v631_v4, %v631_v4 }
 0x4d8   :  { %v634_v10 = vmul.f32 %v630_v7, %v630_v7  ;;  %v3439_v12 = vpop.f32.mrb[10].mxu0 }
 0x4d9   :  { %v621_v13 = vpop.f32.mrb[11].mxu0  ;;  %v633_v16 = vmax.f32 %v3439_v12, 0.0 }
 0x4da   :  { %v638_v15 = vadd.f32 %v635_v9, %v634_v10  ;;  %v632_v18 = vmax.f32 %v621_v13, 0.0 }
 0x4db   :  { %v637_v21 = vmul.f32 %v633_v16, %v633_v16 }
 0x4dc   :  { %v636_v19 = vmul.f32 %v632_v18, %v632_v18 }
 0x4de   :  { %v639_v22 = vadd.f32 %v638_v15, %v636_v19 }
 0x4e0   :  { %v640_v23 = vadd.f32 %v639_v22, %v637_v21 }
 0x4e2   :  { %v641_v24 = vrot.slane %v640_v23, 4 }
 0x4e4   :  { %v642_v25 = vadd.f32 %v641_v24, %v640_v23  ;;  %v2995_v23 = vld [vmem:[%s5125_s3 + $0x68] sm:$0xff]  ;;  %v2996_v24 = vld [vmem:[%s5125_s3 + $0x70] sm:$0xff] }
 0x4e6   :  { %v643_v26 = vrot.slane %v642_v25, 2 }
 0x4e8   :  { %v644_v27 = vadd.f32 %v643_v26, %v642_v25  ;;  %v2997_v25 = vld [vmem:[%s5125_s3 + $0x78] sm:$0xff] }
 0x4ea   :  { %v645_v28 = vrot.slane %v644_v27, 1 }
 0x4ec   :  { %v646_v29 = vadd.f32 %v645_v28, %v644_v27 }
 0x4ee   :  { %v647_v30 = vmax.f32 %v646_v29, 1e-24 }
 0x4f0   :  { %4077 = vrsqrt.f32 %v647_v30  ;;  %v3002_v30 = vld [vmem:[%s5125_s3 + $0x80] sm:$0xff] }
 0x4fa   :  { %v4078_v31 = vpop.eup %4077 }
 0x4fb   :  { %v651_v32 = vmul.f32 %v4078_v31, %v632_v18  ;;  %v649_v33 = vmul.f32 %v4078_v31, %v630_v7  ;;  %v650_v34 = vmul.f32 %v4078_v31, %v631_v4  ;;  %v652_v35 = vmul.f32 %v4078_v31, %v633_v16 }
 0x4fd   :  { %v4355_v36 = vpack.c.bf16 %v650_v34, %v649_v33  ;;  %v4357_v37 = vpack.c.bf16 %v652_v35, %v651_v32 }
 0x4ff   :  { %3809 = vmatprep.subr.bf16.mxu1 %v4355_v36 }
 0x500   :  { %3811 = vmatpush3.bf16.msra.mxu1 %v4355_v36 }
 0x501   :  { %3813 = vmatprep.subr.bf16.mxu1 %v4357_v37 }
 0x504   :  { %3815 = vmatpush3.bf16.msra.mxu1 %v4357_v37 }
 0x505   :  { %3817 = vmatprep.subr.bf16.mxu1 %v4266_v60 }
 0x507   :  { %3449 = vmatmul.mubr.msk.f32.vlgmr.msra.gmra.mrb[8].mxu1 %vm201_vm0, %v2987_v38 }
 0x508   :  { %3451 = vmatprep.mubr.msk.f32.mxu1 %vm201_vm0, %v2988_v39  ;;  %3819 = vmatpush3.bf16.msra.mxu1 %v4266_v60 }
 0x509   :  { %3821 = vmatprep.subr.bf16.mxu1 %v4276_v1 }
 0x50b   :  { %3452 = vmatmul.mubr.msk.f32.gmra.mrb[10].mxu1 %vm201_vm0, %v2989_v40 }
 0x50c   :  { %3823 = vmatpush3.bf16.msra.mxu1 %v4276_v1 }
 0x50d   :  { %3825 = vmatprep.subr.bf16.mxu1 %v4285_v5 }
 0x510   :  { %3827 = vmatpush3.bf16.msra.mxu1 %v4285_v5 }
 0x511   :  { %3829 = vmatprep.subr.bf16.mxu1 %v4290_v8 }
 0x514   :  { %3831 = vmatpush3.bf16.msra.mxu1 %v4290_v8 }
 0x515   :  { %3833 = vmatprep.subr.bf16.mxu1 %v4294_v11 }
 0x518   :  { %3835 = vmatpush3.bf16.msra.mxu1 %v4294_v11 }
 0x519   :  { %3837 = vmatprep.subr.bf16.mxu1 %v4298_v14 }
 0x51c   :  { %3839 = vmatpush3.bf16.msra.mxu1 %v4298_v14 }
 0x51d   :  { %3841 = vmatprep.subr.bf16.mxu1 %v4302_v17 }
 0x520   :  { %3843 = vmatpush3.bf16.msra.mxu1 %v4302_v17 }
 0x521   :  { %3845 = vmatprep.subr.bf16.mxu1 %v4306_v20 }
 0x524   :  { %3847 = vmatpush3.bf16.msra.mxu1 %v4306_v20 }
 0x5da   :  { %v3450_v41 = vpop.f32.mrb[8].mxu1 }
 0x5db   :  { %v740_v42 = vpop.f32.mrb[9].mxu1 }
 0x5dc   :  { %3486 = vmatprep.mubr.f32.mxu1 %v740_v42 }
 0x5dd   :  { %3487 = vmatmul.mubr.f32.vlgmr.msra.gmra.mrb[12].mxu1 %v3450_v41 }
 0x5de   :  { %v3453_v43 = vpop.f32.mrb[10].mxu1 }
 0x5df   :  { %v750_v44 = vpop.f32.mrb[11].mxu1 }
 0x5e0   :  { %3489 = vmatprep.mubr.f32.mxu1 %v750_v44 }
 0x5e1   :  { %3490 = vmatmul.mubr.f32.gmra.mrb[14].mxu1 %v3453_v43 }
 0x5e2   :  { %3552 = vmatprep.mubr.msk.f32.mxu1 %vm201_vm0, %v3002_v30  ;;  %v1600_v30 = vld [vmem:[%s5127_s5 + $0x30] sm:$0xff] }
 0x6b0   :  { %v3488_v46 = vpop.f32.mrb[12].mxu1 }
 0x6b1   :  { %v861_v47 = vmax.f32 %v3488_v46, 0.0  ;;  %v841_v48 = vpop.f32.mrb[13].mxu1 }
 0x6b2   :  { %v860_v49 = vmax.f32 %v841_v48, 0.0 }
 0x6b3   :  { %v865_v50 = vmul.f32 %v861_v47, %v861_v47 }
 0x6b4   :  { %v864_v51 = vmul.f32 %v860_v49, %v860_v49  ;;  %v3491_v52 = vpop.f32.mrb[14].mxu1 }
 0x6b5   :  { %v851_v55 = vpop.f32.mrb[15].mxu1  ;;  %v863_v59 = vmax.f32 %v3491_v52, 0.0 }
 0x6b6   :  { %v868_v58 = vadd.f32 %v865_v50, %v864_v51  ;;  %v862_v61 = vmax.f32 %v851_v55, 0.0 }
 0x6b7   :  { %v867_v63 = vmul.f32 %v863_v59, %v863_v59 }
 0x6b8   :  { %v866_v62 = vmul.f32 %v862_v61, %v862_v61 }
 0x6ba   :  { %v869_v0 = vadd.f32 %v868_v58, %v866_v62 }
 0x6bc   :  { %v870_v2 = vadd.f32 %v869_v0, %v867_v63 }
 0x6be   :  { %v871_v3 = vrot.slane %v870_v2, 4 }
 0x6c0   :  { %v872_v4 = vadd.f32 %v871_v3, %v870_v2 }
 0x6c2   :  { %v873_v6 = vrot.slane %v872_v4, 2 }
 0x6c4   :  { %v874_v7 = vadd.f32 %v873_v6, %v872_v4  ;;  %v3003_v4 = vld [vmem:[%s5125_s3 + $0x88] sm:$0xff]  ;;  %v3004_v6 = vld [vmem:[%s5125_s3 + $0x90] sm:$0xff] }
 0x6c6   :  { %v875_v9 = vrot.slane %v874_v7, 1 }
 0x6c8   :  { %v876_v10 = vadd.f32 %v875_v9, %v874_v7  ;;  %v3005_v7 = vld [vmem:[%s5125_s3 + $0x98] sm:$0xff] }
 0x6ca   :  { %v877_v12 = vmax.f32 %v876_v10, 1e-24 }
 0x6cc   :  { %4079 = vrsqrt.f32 %v877_v12 }
 0x6d6   :  { %v4080_v13 = vpop.eup %4079 }
 0x6d7   :  { %v881_v15 = vmul.f32 %v4080_v13, %v862_v61  ;;  %v879_v16 = vmul.f32 %v4080_v13, %v860_v49  ;;  %v880_v18 = vmul.f32 %v4080_v13, %v861_v47  ;;  %v882_v19 = vmul.f32 %v4080_v13, %v863_v59 }
 0x6d9   :  { %v4395_v21 = vpack.c.bf16 %v880_v18, %v879_v16  ;;  %v4397_v22 = vpack.c.bf16 %v882_v19, %v881_v15  ;;  %v4161_v15 = vmov 0.0   ;;  %v4499_v16 = vld [vmem:[%s5126_s4 + $0x10] sm:$0xff]  ;;  %v1594_v18 = vld [vmem:[%s5127_s5] sm:$0xff] }
 0x6da   :  { %v1596_v19 = vld [vmem:[%s5127_s5 + $0x10] sm:$0xff] }
 0x6db   :  { %3849 = vmatprep.subr.bf16.mxu0 %v4395_v21 }
 0x6dc   :  { %3851 = vmatpush3.bf16.msra.mxu0 %v4395_v21 }
 0x6dd   :  { %3853 = vmatprep.subr.bf16.mxu0 %v4397_v22 }
 0x6e0   :  { %3855 = vmatpush3.bf16.msra.mxu0 %v4397_v22 }
 0x6e1   :  { %3857 = vmatprep.subr.bf16.mxu0 %v4266_v60 }
 0x6e3   :  { %3501 = vmatmul.mubr.msk.f32.vlgmr.msra.gmra.mrb[12].mxu0 %vm201_vm0, %v2995_v23  ;;  %v1595_v23 = vld [vmem:[%s5127_s5 + $0x8] sm:$0xff] }
 0x6e4   :  { %3503 = vmatprep.mubr.msk.f32.mxu0 %vm201_vm0, %v2996_v24  ;;  %3859 = vmatpush3.bf16.msra.mxu0 %v4266_v60  ;;  %v1597_v24 = vld [vmem:[%s5127_s5 + $0x18] sm:$0xff] }
 0x6e5   :  { %3861 = vmatprep.subr.bf16.mxu0 %v4276_v1 }
 0x6e7   :  { %3504 = vmatmul.mubr.msk.f32.gmra.mrb[14].mxu0 %vm201_vm0, %v2997_v25  ;;  %v4519_v25 = vld [vmem:[%s5126_s4 + $0x18] sm:$0xff] }
 0x6e8   :  { %3863 = vmatpush3.bf16.msra.mxu0 %v4276_v1 }
 0x6e9   :  { %3865 = vmatprep.subr.bf16.mxu0 %v4285_v5 }
 0x6ec   :  { %3867 = vmatpush3.bf16.msra.mxu0 %v4285_v5 }
 0x6ed   :  { %3869 = vmatprep.subr.bf16.mxu0 %v4290_v8 }
 0x6f0   :  { %3871 = vmatpush3.bf16.msra.mxu0 %v4290_v8 }
 0x6f1   :  { %3873 = vmatprep.subr.bf16.mxu0 %v4294_v11 }
 0x6f4   :  { %3875 = vmatpush3.bf16.msra.mxu0 %v4294_v11 }
 0x6f5   :  { %3877 = vmatprep.subr.bf16.mxu0 %v4298_v14 }
 0x6f8   :  { %3879 = vmatpush3.bf16.msra.mxu0 %v4298_v14 }
 0x6f9   :  { %3881 = vmatprep.subr.bf16.mxu0 %v4302_v17 }
 0x6fc   :  { %3883 = vmatpush3.bf16.msra.mxu0 %v4302_v17 }
 0x6fd   :  { %3885 = vmatprep.subr.bf16.mxu0 %v4306_v20 }
 0x700   :  { %3887 = vmatpush3.bf16.msra.mxu0 %v4306_v20 }
 0x7b6   :  { %v3502_v26 = vpop.f32.mrb[12].mxu0 }
 0x7b7   :  { %v970_v27 = vpop.f32.mrb[13].mxu0 }
 0x7b8   :  { %3538 = vmatprep.mubr.f32.mxu0 %v970_v27  ;;  %v1598_v27 = vld [vmem:[%s5127_s5 + $0x20] sm:$0xff] }
 0x7b9   :  { %3539 = vmatmul.mubr.f32.vlgmr.msra.gmra.mrb[16].mxu0 %v3502_v26  ;;  %v1599_v26 = vld [vmem:[%s5127_s5 + $0x28] sm:$0xff] }
 0x7ba   :  { %v3505_v28 = vpop.f32.mrb[14].mxu0 }
 0x7bb   :  { %v980_v29 = vpop.f32.mrb[15].mxu0 }
 0x7bc   :  { %3541 = vmatprep.mubr.f32.mxu0 %v980_v29  ;;  %v1601_v29 = vld [vmem:[%s5127_s5 + $0x38] sm:$0xff] }
 0x7bd   :  { %3542 = vmatmul.mubr.f32.gmra.mrb[18].mxu0 %v3505_v28  ;;  %v4533_v28 = vld [vmem:[%s5126_s4 + $0x20] sm:$0xff] }
 0x88c   :  { %v3540_v31 = vpop.f32.mrb[16].mxu0 }
 0x88d   :  { %v1091_v32 = vmax.f32 %v3540_v31, 0.0  ;;  %v1071_v33 = vpop.f32.mrb[17].mxu0  ;;  %v4547_v31 = vld [vmem:[%s5126_s4 + $0x28] sm:$0xff] }
 0x88e   :  { %v1090_v34 = vmax.f32 %v1071_v33, 0.0  ;;  %v4563_v33 = vld [vmem:[%s5126_s4 + $0x38] sm:$0xff] }
 0x88f   :  { %v1095_v35 = vmul.f32 %v1091_v32, %v1091_v32 }
 0x890   :  { %v1094_v38 = vmul.f32 %v1090_v34, %v1090_v34  ;;  %v3543_v39 = vpop.f32.mrb[18].mxu0 }
 0x891   :  { %v1081_v40 = vpop.f32.mrb[19].mxu0  ;;  %v1093_v42 = vmax.f32 %v3543_v39, 0.0 }
 0x892   :  { %v1098_v41 = vadd.f32 %v1095_v35, %v1094_v38  ;;  %v1092_v43 = vmax.f32 %v1081_v40, 0.0 }
 0x893   :  { %v1097_v45 = vmul.f32 %v1093_v42, %v1093_v42 }
 0x894   :  { %v1096_v44 = vmul.f32 %v1092_v43, %v1092_v43 }
 0x896   :  { %v1099_v46 = vadd.f32 %v1098_v41, %v1096_v44 }
 0x898   :  { %v1100_v47 = vadd.f32 %v1099_v46, %v1097_v45 }
 0x89a   :  { %v1101_v48 = vrot.slane %v1100_v47, 4 }
 0x89c   :  { %v1102_v49 = vadd.f32 %v1101_v48, %v1100_v47 }
 0x89e   :  { %v1103_v50 = vrot.slane %v1102_v49, 2 }
 0x8a0   :  { %v1104_v51 = vadd.f32 %v1103_v50, %v1102_v49 }
 0x8a2   :  { %v1105_v52 = vrot.slane %v1104_v51, 1 }
 0x8a4   :  { %v1106_v55 = vadd.f32 %v1105_v52, %v1104_v51 }
 0x8a6   :  { %v1107_v58 = vmax.f32 %v1106_v55, 1e-24 }
 0x8a8   :  { %4081 = vrsqrt.f32 %v1107_v58 }
 0x8b2   :  { %v4082_v59 = vpop.eup %4081 }
 0x8b3   :  { %v1111_v61 = vmul.f32 %v4082_v59, %v1092_v43  ;;  %v1109_v62 = vmul.f32 %v4082_v59, %v1090_v34  ;;  %v1110_v63 = vmul.f32 %v4082_v59, %v1091_v32  ;;  %v1112_v0 = vmul.f32 %v4082_v59, %v1093_v42  ;;  %v4555_v32 = vld [vmem:[%s5126_s4 + $0x30] sm:$0xff] }
 0x8b5   :  { %v4435_v2 = vpack.c.bf16 %v1110_v63, %v1109_v62  ;;  %v4437_v3 = vpack.c.bf16 %v1112_v0, %v1111_v61 }
 0x8b7   :  { %3889 = vmatprep.subr.bf16.mxu1 %v4435_v2 }
 0x8b8   :  { %3891 = vmatpush3.bf16.msra.mxu1 %v4435_v2 }
 0x8b9   :  { %3893 = vmatprep.subr.bf16.mxu1 %v4437_v3 }
 0x8bc   :  { %3895 = vmatpush3.bf16.msra.mxu1 %v4437_v3 }
 0x8bd   :  { %3897 = vmatprep.subr.bf16.mxu1 %v4266_v60 }
 0x8bf   :  { %3553 = vmatmul.mubr.msk.f32.vlgmr.msra.gmra.mrb[16].mxu1 %vm201_vm0, %v3003_v4 }
 0x8c0   :  { %3899 = vmatpush3.bf16.msra.mxu1 %v4266_v60  ;;  %3555 = vmatprep.mubr.msk.f32.mxu1 %vm201_vm0, %v3004_v6 }
 0x8c1   :  { %3901 = vmatprep.subr.bf16.mxu1 %v4276_v1 }
 0x8c3   :  { %3556 = vmatmul.mubr.msk.f32.gmra.mrb[18].mxu1 %vm201_vm0, %v3005_v7 }
 0x8c4   :  { %3903 = vmatpush3.bf16.msra.mxu1 %v4276_v1 }
 0x8c5   :  { %3905 = vmatprep.subr.bf16.mxu1 %v4285_v5 }
 0x8c8   :  { %3907 = vmatpush3.bf16.msra.mxu1 %v4285_v5 }
 0x8c9   :  { %3909 = vmatprep.subr.bf16.mxu1 %v4290_v8 }
 0x8cc   :  { %3911 = vmatpush3.bf16.msra.mxu1 %v4290_v8 }
 0x8cd   :  { %3913 = vmatprep.subr.bf16.mxu1 %v4294_v11 }
 0x8d0   :  { %3915 = vmatpush3.bf16.msra.mxu1 %v4294_v11 }
 0x8d1   :  { %3917 = vmatprep.subr.bf16.mxu1 %v4298_v14 }
 0x8d4   :  { %3919 = vmatpush3.bf16.msra.mxu1 %v4298_v14 }
 0x8d5   :  { %3921 = vmatprep.subr.bf16.mxu1 %v4302_v17 }
 0x8d8   :  { %3923 = vmatpush3.bf16.msra.mxu1 %v4302_v17 }
 0x8d9   :  { %3925 = vmatprep.subr.bf16.mxu1 %v4306_v20 }
 0x8dc   :  { %3927 = vmatpush3.bf16.msra.mxu1 %v4306_v20 }
 0x8dd   :  { %3969 = vmatprep.subr.bf16.mxu1 %v4315_v53  ;;  %v4479_v53 = vld [vmem:[%s5126_s4] sm:$0xff] }
 0x992   :  { %v3554_v9 = vpop.f32.mrb[16].mxu1 }
 0x993   :  { %v1200_v10 = vpop.f32.mrb[17].mxu1 }
 0x994   :  { %3590 = vmatprep.mubr.f32.mxu1 %v1200_v10 }
 0x995   :  { %3591 = vmatmul.mubr.f32.vlgmr.msra.gmra.mrb[20].mxu1 %v3554_v9 }
 0x996   :  { %3971 = vmatpush1.bf16.msra.mxu1 %v4259_v56  ;;  %v3557_v12 = vpop.f32.mrb[18].mxu1  ;;  %v3010_v56 = vld [vmem:[%s5125_s3 + $0xa0] sm:$0xff] }
 0x997   :  { %3973 = vmatprep.subr.bf16.mxu1 %v4317_v54  ;;  %v1210_v13 = vpop.f32.mrb[19].mxu1  ;;  %3604 = vmatprep.mubr.msk.f32.mxu0 %vm201_vm0, %v3010_v56  ;;  %v4162_v54 = vmov 0  }
 0x998   :  { %3593 = vmatprep.mubr.f32.mxu1 %v1210_v13  ;;  %4071 = vset.pattern.permute.xlu0 %v4162_v54  ;;  %v3012_v13 = vld [vmem:[%s5125_s3 + $0xb0] sm:$0xff] }
 0x999   :  { %3594 = vmatmul.mubr.f32.gmra.mrb[22].mxu1 %v3557_v12  ;;  %4072 = vset.pattern.permute.xlu1 %v4162_v54  ;;  %v3011_v12 = vld [vmem:[%s5125_s3 + $0xa8] sm:$0xff] }
 0x99a   :  { %3975 = vmatpush1.bf16.msra.mxu1 %v4261_v57  ;;  %1730 = vmatprep.mubr.f32.mxu1 %v4161_v15  ;;  %v4491_v57 = vld [vmem:[%s5126_s4 + $0x8] sm:$0xff] }
 0x99b   :  { %1604 = vperm.xlu0 %4071, %v1594_v18   ;;  %1614 = vperm.xlu1 %4072, %v1596_v19  }
 0x99d   :  { %3018 = vmatmul.mubr.msk.f32.vlgmr.msra.gmra.mrb[24].mxu1 %vm201_vm0, %v4479_v53 }
 0x99e   :  { %1736 = vmatprep.mubr.f32.mxu1 %v4161_v15 }
 0x99f   :  { %1609 = vperm.xlu0 %4071, %v1595_v23   ;;  %1619 = vperm.xlu1 %4072, %v1597_v24  }
 0x9a1   :  { %3019 = vmatmul.mubr.msk.f32.gmra.mrb[26].mxu1 %vm201_vm0, %v4491_v57 }
 0x9a2   :  { %1742 = vmatprep.mubr.f32.mxu1 %v4161_v15 }
 0x9a3   :  { %1629 = vperm.xlu1 %4072, %v1599_v26   ;;  %1624 = vperm.xlu0 %4071, %v1598_v27  }
 0x9a5   :  { %3020 = vmatmul.mubr.msk.f32.gmra.mrb[28].mxu1 %vm201_vm0, %v4499_v16 }
 0x9a6   :  { %1748 = vmatprep.mubr.f32.mxu1 %v4161_v15 }
 0x9a7   :  { %1639 = vperm.xlu1 %4072, %v1601_v29   ;;  %1634 = vperm.xlu0 %4071, %v1600_v30  }
 0x9a9   :  { %3021 = vmatmul.mubr.msk.f32.gmra.mrb[30].mxu1 %vm201_vm0, %v4519_v25 }
 0x9aa   :  { %1754 = vmatprep.mubr.f32.mxu1 %v4161_v15 }
 0x9ad   :  { %3022 = vmatmul.mubr.msk.f32.gmra.mrb[32].mxu1 %vm201_vm0, %v4533_v28 }
 0x9ae   :  { %1760 = vmatprep.mubr.f32.mxu1 %v4161_v15 }
 0x9b1   :  { %3023 = vmatmul.mubr.msk.f32.gmra.mrb[34].mxu1 %vm201_vm0, %v4547_v31 }
 0x9b2   :  { %1766 = vmatprep.mubr.f32.mxu1 %v4161_v15 }
 0x9b5   :  { %3024 = vmatmul.mubr.msk.f32.gmra.mrb[36].mxu1 %vm201_vm0, %v4555_v32 }
 0x9b6   :  { %1772 = vmatprep.mubr.f32.mxu1 %v4161_v15 }
 0x9b9   :  { %3025 = vmatmul.mubr.msk.f32.gmra.mrb[38].mxu1 %vm201_vm0, %v4563_v33 }
 0x9ba   :  { %1956 = vmatprep.mubr.f32.mxu1 %v4161_v15 }
 0xa68   :  { %v3592_v34 = vpop.f32.mrb[20].mxu1 }
 0xa69   :  { %v1321_v35 = vmax.f32 %v3592_v34, 0.0  ;;  %v1301_v38 = vpop.f32.mrb[21].mxu1 }
 0xa6a   :  { %v1320_v39 = vmax.f32 %v1301_v38, 0.0 }
 0xa6b   :  { %v1325_v40 = vmul.f32 %v1321_v35, %v1321_v35 }
 0xa6c   :  { %v1324_v41 = vmul.f32 %v1320_v39, %v1320_v39  ;;  %v3595_v42 = vpop.f32.mrb[22].mxu1 }
 0xa6d   :  { %v1311_v43 = vpop.f32.mrb[23].mxu1  ;;  %v1323_v45 = vmax.f32 %v3595_v42, 0.0 }
 0xa6e   :  { %v1328_v44 = vadd.f32 %v1325_v40, %v1324_v41  ;;  %v1322_v46 = vmax.f32 %v1311_v43, 0.0 }
 0xa6f   :  { %v1327_v48 = vmul.f32 %v1323_v45, %v1323_v45 }
 0xa70   :  { %v1326_v47 = vmul.f32 %v1322_v46, %v1322_v46 }
 0xa72   :  { %v1329_v49 = vadd.f32 %v1328_v44, %v1326_v47 }
 0xa74   :  { %v1330_v50 = vadd.f32 %v1329_v49, %v1327_v48 }
 0xa76   :  { %v1331_v51 = vrot.slane %v1330_v50, 4 }
 0xa78   :  { %v1332_v52 = vadd.f32 %v1331_v51, %v1330_v50 }
 0xa7a   :  { %v1333_v55 = vrot.slane %v1332_v52, 2 }
 0xa7c   :  { %v1334_v58 = vadd.f32 %v1333_v55, %v1332_v52 }
 0xa7e   :  { %v1335_v59 = vrot.slane %v1334_v58, 1 }
 0xa80   :  { %v1336_v61 = vadd.f32 %v1335_v59, %v1334_v58 }
 0xa82   :  { %v1337_v62 = vmax.f32 %v1336_v61, 1e-24 }
 0xa84   :  { %4083 = vrsqrt.f32 %v1337_v62 }
 0xa8e   :  { %v4084_v63 = vpop.eup %4083 }
 0xa8f   :  { %v1341_v0 = vmul.f32 %v4084_v63, %v1322_v46  ;;  %v1339_v4 = vmul.f32 %v4084_v63, %v1320_v39  ;;  %v1340_v6 = vmul.f32 %v4084_v63, %v1321_v35  ;;  %v1342_v7 = vmul.f32 %v4084_v63, %v1323_v45 }
 0xa91   :  { %v3928_v9 = vpack.c.bf16 %v1340_v6, %v1339_v4  ;;  %v3932_v10 = vpack.c.bf16 %v1342_v7, %v1341_v0 }
 0xa93   :  { %3929 = vmatprep.subr.bf16.mxu0 %v3928_v9  ;;  %3985 = vmatprep.subr.bf16.mxu1 %v3928_v9 }
 0xa94   :  { %3931 = vmatpush3.bf16.msra.mxu0 %v3928_v9  ;;  %3987 = vmatpush1.bf16.msra.mxu1 %v4435_v2  ;;  %v3013_v2 = vld [vmem:[%s5125_s3 + $0xb8] sm:$0xff] }
 0xa95   :  { %3933 = vmatprep.subr.bf16.mxu0 %v3932_v10  ;;  %3989 = vmatprep.subr.bf16.mxu1 %v3932_v10 }
 0xa98   :  { %3935 = vmatpush3.bf16.msra.mxu0 %v3932_v10  ;;  %3991 = vmatpush1.bf16.msra.mxu1 %v4437_v3 }
 0xa99   :  { %3937 = vmatprep.subr.bf16.mxu0 %v4266_v60 }
 0xa9b   :  { %3605 = vmatmul.mubr.msk.f32.vlgmr.msra.gmra.mrb[20].mxu0 %vm201_vm0, %v3011_v12  ;;  %3034 = vmatmul.mubr.msk.f32.vlgmr.msra.gmra.mrb[40].mxu1 %vm201_vm0, %v4479_v53 }
 0xa9c   :  { %3939 = vmatpush3.bf16.msra.mxu0 %v4266_v60  ;;  %3607 = vmatprep.mubr.msk.f32.mxu0 %vm201_vm0, %v3012_v13  ;;  %v4623_v60 = vpop.permute.xlu0 %1604 }
 0xa9d   :  { %3941 = vmatprep.subr.bf16.mxu0 %v4276_v1  ;;  %1962 = vmatprep.mubr.f32.mxu1 %v4161_v15 }
 0xa9f   :  { %3608 = vmatmul.mubr.msk.f32.gmra.mrb[22].mxu0 %vm201_vm0, %v3013_v2  ;;  %3035 = vmatmul.mubr.msk.f32.gmra.mrb[42].mxu1 %vm201_vm0, %v4491_v57 }
 0xaa0   :  { %3943 = vmatpush3.bf16.msra.mxu0 %v4276_v1  ;;  %1968 = vmatprep.mubr.f32.mxu1 %v4161_v15  ;;  %v1732_v1 = vpop.f32.mrb[24].mxu1  ;;  %v4629_v54 = vpop.permute.xlu0 %1609 }
 0xaa1   :  { %3945 = vmatprep.subr.bf16.mxu0 %v4285_v5 }
 0xaa3   :  { %3036 = vmatmul.mubr.msk.f32.gmra.mrb[44].mxu1 %vm201_vm0, %v4499_v16 }
 0xaa4   :  { %3947 = vmatpush3.bf16.msra.mxu0 %v4285_v5  ;;  %1974 = vmatprep.mubr.f32.mxu1 %v4161_v15  ;;  %v1733_v5 = vadd.f32 %v1732_v1, %v4623_v60  ;;  %v4639_v43 = vpop.permute.xlu0 %1624 }
 0xaa5   :  { %3949 = vmatprep.subr.bf16.mxu0 %v4290_v8 }
 0xaa6   :  { %v2110_v56 = vmax.f32 %v1733_v5, 0.0 }
 0xaa7   :  { %3037 = vmatmul.mubr.msk.f32.gmra.mrb[46].mxu1 %vm201_vm0, %v4519_v25 }
 0xaa8   :  { %3951 = vmatpush3.bf16.msra.mxu0 %v4290_v8  ;;  %1980 = vmatprep.mubr.f32.mxu1 %v4161_v15  ;;  %v1734_v8 = vpop.f32.mrb[25].mxu1  ;;  %v4647_v6 = vpop.permute.xlu0 %1634 }
 0xaa9   :  { %3953 = vmatprep.subr.bf16.mxu0 %v4294_v11 }
 0xaab   :  { %3038 = vmatmul.mubr.msk.f32.gmra.mrb[48].mxu1 %vm201_vm0, %v4533_v28 }
 0xaac   :  { %3955 = vmatpush3.bf16.msra.mxu0 %v4294_v11  ;;  %1986 = vmatprep.mubr.f32.mxu1 %v4161_v15  ;;  %v4626_v11 = vpop.permute.xlu1 %1614 }
 0xaad   :  { %3957 = vmatprep.subr.bf16.mxu0 %v4298_v14 }
 0xaaf   :  { %3039 = vmatmul.mubr.msk.f32.gmra.mrb[50].mxu1 %vm201_vm0, %v4547_v31 }
 0xab0   :  { %3959 = vmatpush3.bf16.msra.mxu0 %v4298_v14  ;;  %1992 = vmatprep.mubr.f32.mxu1 %v4161_v15  ;;  %v1735_v14 = vadd.f32 %v1734_v8, %v4623_v60  ;;  %v4633_v24 = vpop.permute.xlu1 %1619 }
 0xab1   :  { %3961 = vmatprep.subr.bf16.mxu0 %v4302_v17 }
 0xab2   :  { %v2111_v18 = vmax.f32 %v1735_v14, 0.0 }
 0xab3   :  { %3040 = vmatmul.mubr.msk.f32.gmra.mrb[52].mxu1 %vm201_vm0, %v4555_v32 }
 0xab4   :  { %3963 = vmatpush3.bf16.msra.mxu0 %v4302_v17  ;;  %1998 = vmatprep.mubr.f32.mxu1 %v4161_v15  ;;  %v1738_v17 = vpop.f32.mrb[26].mxu1  ;;  %v4641_v46 = vpop.permute.xlu1 %1629 }
 0xab5   :  { %3965 = vmatprep.subr.bf16.mxu0 %v4306_v20  ;;  %v1740_v3 = vpop.f32.mrb[27].mxu1  ;;  %v1739_v26 = vadd.f32 %v1738_v17, %v4629_v54 }
 0xab6   :  { %v1741_v19 = vadd.f32 %v1740_v3, %v4629_v54 }
 0xab7   :  { %3041 = vmatmul.mubr.msk.f32.gmra.mrb[54].mxu1 %vm201_vm0, %v4563_v33  ;;  %v2117_v38 = vmax.f32 %v1739_v26, 0.0  ;;  %v4658_v26 = vld [vmem:[%s5128_s6] sm:$0xff] }
 0xab8   :  { %3967 = vmatpush3.bf16.msra.mxu0 %v4306_v20  ;;  %2311 = vmatprep.mubr.f32.mxu1 %v4161_v15  ;;  %v1744_v20 = vpop.f32.mrb[28].mxu1  ;;  %v2118_v30 = vmax.f32 %v1741_v19, 0.0  ;;  %v4650_v13 = vpop.permute.xlu1 %1639 }
 0xab9   :  { %3977 = vmatprep.subr.bf16.mxu0 %v4395_v21  ;;  %v1745_v21 = vadd.f32 %v1744_v20, %v4626_v11  ;;  %v1746_v23 = vpop.f32.mrb[29].mxu1  ;;  %v4002_v47 = vpack.c.bf16 %v2117_v38, %v2110_v56  ;;  %v4706_v38 = vld [vmem:[%s5128_s6 + $0x30] sm:$0xff] }
 0xaba   :  { %v1747_v27 = vadd.f32 %v1746_v23, %v4626_v11  ;;  %v1750_v29 = vpop.f32.mrb[30].mxu1  ;;  %v4000_v44 = vpack.c.bf16 %v2118_v30, %v2111_v18  ;;  %v4682_v30 = vld [vmem:[%s5128_s6 + $0x18] sm:$0xff] }
 0xabb   :  { %v2124_v34 = vmax.f32 %v1745_v21, 0.0  ;;  %v1752_v35 = vpop.f32.mrb[31].mxu1  ;;  %v1751_v39 = vadd.f32 %v1750_v29, %v4633_v24  ;;  %v4674_v29 = vld [vmem:[%s5128_s6 + $0x10] sm:$0xff] }
 0xabc   :  { %v2125_v40 = vmax.f32 %v1747_v27, 0.0  ;;  %v1753_v41 = vadd.f32 %v1752_v35, %v4633_v24  ;;  %v1756_v42 = vpop.f32.mrb[32].mxu1  ;;  %4001 = vmatprep.subr.bf16.mxu1 %v4000_v44  ;;  %v4666_v27 = vld [vmem:[%s5128_s6 + $0x8] sm:$0xff] }
 0xabd   :  { %v1758_v45 = vpop.f32.mrb[33].mxu1  ;;  %v2131_v48 = vmax.f32 %v1751_v39, 0.0  ;;  %v1757_v49 = vadd.f32 %v1756_v42, %v4639_v43  ;;  %4003 = vmatpush1.bf16.msra.mxu1 %v4002_v47  ;;  %v4698_v35 = vld [vmem:[%s5128_s6 + $0x28] sm:$0xff]  ;;  %v4714_v39 = vld [vmem:[%s5128_s6 + $0x38] sm:$0xff] }
 0xabe   :  { %v2132_v50 = vmax.f32 %v1753_v41, 0.0  ;;  %v1762_v51 = vpop.f32.mrb[34].mxu1  ;;  %v1759_v52 = vadd.f32 %v1758_v45, %v4639_v43 }
 0xabf   :  { %v1764_v55 = vpop.f32.mrb[35].mxu1  ;;  %v4006_v58 = vpack.c.bf16 %v2131_v48, %v2124_v34  ;;  %v1763_v59 = vadd.f32 %v1762_v51, %v4641_v46  ;;  %v2138_v61 = vmax.f32 %v1757_v49, 0.0  ;;  %v4690_v34 = vld [vmem:[%s5128_s6 + $0x20] sm:$0xff] }
 0xac0   :  { %v4004_v62 = vpack.c.bf16 %v2132_v50, %v2125_v40  ;;  %v1765_v63 = vadd.f32 %v1764_v55, %v4641_v46  ;;  %v2139_v0 = vmax.f32 %v1759_v52, 0.0  ;;  %v1768_v4 = vpop.f32.mrb[36].mxu1 }
 0xac1   :  { %v1770_v7 = vpop.f32.mrb[37].mxu1  ;;  %v2145_v9 = vmax.f32 %v1763_v59, 0.0  ;;  %v1769_v10 = vadd.f32 %v1768_v4, %v4647_v6 }
 0xac2   :  { %v2146_v12 = vmax.f32 %v1765_v63, 0.0  ;;  %4005 = vmatprep.subr.bf16.mxu1 %v4004_v62  ;;  %v1771_v2 = vadd.f32 %v1770_v7, %v4647_v6  ;;  %v1774_v8 = vpop.f32.mrb[38].mxu1 }
 0xac3   :  { %v4010_v1 = vpack.c.bf16 %v2145_v9, %v2138_v61  ;;  %4007 = vmatpush1.bf16.msra.mxu1 %v4006_v58  ;;  %v1776_v14 = vpop.f32.mrb[39].mxu1  ;;  %v1775_v17 = vadd.f32 %v1774_v8, %v4650_v13  ;;  %v2152_v3 = vmax.f32 %v1769_v10, 0.0 }
 0xac4   :  { %v4008_v5 = vpack.c.bf16 %v2146_v12, %v2139_v0  ;;  %v1777_v56 = vadd.f32 %v1776_v14, %v4650_v13  ;;  %v2153_v20 = vmax.f32 %v1771_v2, 0.0 }
 0xac5   :  { %v2159_v18 = vmax.f32 %v1775_v17, 0.0 }
 0xac6   :  { %4009 = vmatprep.subr.bf16.mxu1 %v4008_v5  ;;  %v2160_v19 = vmax.f32 %v1777_v56, 0.0 }
 0xac7   :  { %4011 = vmatpush1.bf16.msra.mxu1 %v4010_v1  ;;  %v4014_v21 = vpack.c.bf16 %v2159_v18, %v2152_v3 }
 0xac8   :  { %v4012_v23 = vpack.c.bf16 %v2160_v19, %v2153_v20 }
 0xaca   :  { %4013 = vmatprep.subr.bf16.mxu1 %v4012_v23 }
 0xacb   :  { %4015 = vmatpush1.bf16.msra.mxu1 %v4014_v21 }
 0xace   :  { %3050 = vmatmul.mubr.msk.f32.vlgmr.msra.gmra.mrb[56].mxu1 %vm2222_vm1, %v4658_v26 }
 0xacf   :  { %2317 = vmatprep.mubr.f32.mxu1 %v4161_v15 }
 0xad2   :  { %3051 = vmatmul.mubr.msk.f32.gmra.mrb[58].mxu1 %vm2222_vm1, %v4666_v27 }
 0xad3   :  { %2323 = vmatprep.mubr.f32.mxu1 %v4161_v15 }
 0xad6   :  { %3052 = vmatmul.mubr.msk.f32.gmra.mrb[60].mxu1 %vm2222_vm1, %v4674_v29 }
 0xad7   :  { %2329 = vmatprep.mubr.f32.mxu1 %v4161_v15 }
 0xada   :  { %3053 = vmatmul.mubr.msk.f32.gmra.mrb[62].mxu1 %vm2222_vm1, %v4682_v30 }
 0xadb   :  { %2335 = vmatprep.mubr.f32.mxu1 %v4161_v15 }
 0xade   :  { %3054 = vmatmul.mubr.msk.f32.gmra.mrb[64].mxu1 %vm2222_vm1, %v4690_v34 }
 0xadf   :  { %2341 = vmatprep.mubr.f32.mxu1 %v4161_v15 }
 0xae2   :  { %3055 = vmatmul.mubr.msk.f32.gmra.mrb[66].mxu1 %vm2222_vm1, %v4698_v35 }
 0xae3   :  { %2347 = vmatprep.mubr.f32.mxu1 %v4161_v15 }
 0xae6   :  { %3056 = vmatmul.mubr.msk.f32.gmra.mrb[68].mxu1 %vm2222_vm1, %v4706_v38 }
 0xae7   :  { %2353 = vmatprep.mubr.f32.mxu1 %v4161_v15 }
 0xaea   :  { %3057 = vmatmul.mubr.msk.f32.gmra.mrb[70].mxu1 %vm2222_vm1, %v4714_v39 }
 0xaeb   :  { %2537 = vmatprep.mubr.f32.mxu1 %v4161_v15 }
 0xb6e   :  { %v3606_v40 = vpop.f32.mrb[20].mxu0  ;;  %v1958_v41 = vpop.f32.mrb[40].mxu1 }
 0xb6f   :  { %v1430_v42 = vpop.f32.mrb[21].mxu0  ;;  %v1959_v44 = vadd.f32 %v1958_v41, %v4623_v60  ;;  %v1960_v45 = vpop.f32.mrb[41].mxu1 }
 0xb70   :  { %3642 = vmatprep.mubr.f32.mxu0 %v1430_v42  ;;  %v1961_v47 = vadd.f32 %v1960_v45, %v4623_v60 }
 0xb71   :  { %3643 = vmatmul.mubr.f32.vlgmr.msra.gmra.mrb[24].mxu0 %v3606_v40  ;;  %v2114_v51 = vmax.f32 %v1959_v44, 0.0 }
 0xb72   :  { %3979 = vmatpush1.bf16.msra.mxu0 %v4355_v36  ;;  %v3609_v48 = vpop.f32.mrb[22].mxu0  ;;  %v1964_v49 = vpop.f32.mrb[42].mxu1  ;;  %v2115_v58 = vmax.f32 %v1961_v47, 0.0 }
 0xb73   :  { %3981 = vmatprep.subr.bf16.mxu0 %v4397_v22  ;;  %v1440_v50 = vpop.f32.mrb[23].mxu0  ;;  %v1965_v52 = vadd.f32 %v1964_v49, %v4629_v54  ;;  %v1966_v55 = vpop.f32.mrb[43].mxu1 }
 0xb74   :  { %3645 = vmatprep.mubr.f32.mxu0 %v1440_v50  ;;  %v1967_v59 = vadd.f32 %v1966_v55, %v4629_v54 }
 0xb75   :  { %3646 = vmatmul.mubr.f32.gmra.mrb[26].mxu0 %v3609_v48  ;;  %v2121_v61 = vmax.f32 %v1965_v52, 0.0 }
 0xb76   :  { %3983 = vmatpush1.bf16.msra.mxu0 %v4357_v37  ;;  %1843 = vmatprep.mubr.f32.mxu0 %v4161_v15  ;;  %v2122_v36 = vmax.f32 %v1967_v59, 0.0  ;;  %v1970_v62 = vpop.f32.mrb[44].mxu1 }
 0xb77   :  { %v4034_v63 = vpack.c.bf16 %v2121_v61, %v2114_v51  ;;  %v1971_v22 = vadd.f32 %v1970_v62, %v4626_v11  ;;  %v1972_v0 = vpop.f32.mrb[45].mxu1 }
 0xb78   :  { %v4032_v4 = vpack.c.bf16 %v2122_v36, %v2115_v58  ;;  %v1973_v7 = vadd.f32 %v1972_v0, %v4626_v11 }
 0xb79   :  { %3026 = vmatmul.mubr.msk.f32.vlgmr.msra.gmra.mrb[28].mxu0 %vm201_vm0, %v4479_v53  ;;  %v2128_v10 = vmax.f32 %v1971_v22, 0.0 }
 0xb7a   :  { %1849 = vmatprep.mubr.f32.mxu0 %v4161_v15  ;;  %v1976_v9 = vpop.f32.mrb[46].mxu1  ;;  %4033 = vmatprep.subr.bf16.mxu1 %v4032_v4  ;;  %v2129_v2 = vmax.f32 %v1973_v7, 0.0  ;;  %v2175_v7 = vld [vmem:[%s5129_s7 + $0x8] sm:$0xff] }
 0xb7b   :  { %v1977_v37 = vadd.f32 %v1976_v9, %v4633_v24  ;;  %v1978_v12 = vpop.f32.mrb[47].mxu1  ;;  %4035 = vmatpush1.bf16.msra.mxu1 %v4034_v63  ;;  %2189 = vperm.xlu1 %4072, %v2175_v7   ;;  %v2176_v9 = vld [vmem:[%s5129_s7 + $0x10] sm:$0xff] }
 0xb7c   :  { %v1979_v1 = vadd.f32 %v1978_v12, %v4633_v24  ;;  %v2748_v12 = vld [vmem:[%s5130_s8 + $0x8] sm:$0xff] }
 0xb7d   :  { %3027 = vmatmul.mubr.msk.f32.gmra.mrb[30].mxu0 %vm201_vm0, %v4491_v57  ;;  %v2135_v5 = vmax.f32 %v1977_v37, 0.0  ;;  %v2747_v37 = vld [vmem:[%s5130_s8] sm:$0xff] }
 0xb7e   :  { %1855 = vmatprep.mubr.f32.mxu0 %v4161_v15  ;;  %v2136_v8 = vmax.f32 %v1979_v1, 0.0  ;;  %v1982_v14 = vpop.f32.mrb[48].mxu1  ;;  %v2749_v1 = vld [vmem:[%s5130_s8 + $0x10] sm:$0xff] }
 0xb7f   :  { %v4038_v17 = vpack.c.bf16 %v2135_v5, %v2128_v10  ;;  %v1983_v3 = vadd.f32 %v1982_v14, %v4639_v43  ;;  %v1984_v56 = vpop.f32.mrb[49].mxu1  ;;  %v2177_v10 = vld [vmem:[%s5129_s7 + $0x18] sm:$0xff]  ;;  %v2179_v5 = vld [vmem:[%s5129_s7 + $0x28] sm:$0xff]  ;;  %v2180_v14 = vld [vmem:[%s5129_s7 + $0x30] sm:$0xff] }
 0xb80   :  { %v4036_v20 = vpack.c.bf16 %v2136_v8, %v2129_v2  ;;  %v1985_v18 = vadd.f32 %v1984_v56, %v4639_v43  ;;  %2199 = vperm.xlu1 %4072, %v2177_v10   ;;  %v2178_v2 = vld [vmem:[%s5129_s7 + $0x20] sm:$0xff]  ;;  %v2750_v8 = vld [vmem:[%s5130_s8 + $0x18] sm:$0xff]  ;;  %v2752_v56 = vld [vmem:[%s5130_s8 + $0x28] sm:$0xff] }
 0xb81   :  { %3028 = vmatmul.mubr.msk.f32.gmra.mrb[32].mxu0 %vm201_vm0, %v4499_v16  ;;  %v2142_v21 = vmax.f32 %v1983_v3, 0.0  ;;  %v2181_v3 = vld [vmem:[%s5129_s7 + $0x38] sm:$0xff] }
 0xb82   :  { %1861 = vmatprep.mubr.f32.mxu0 %v4161_v15  ;;  %v1988_v19 = vpop.f32.mrb[50].mxu1  ;;  %4037 = vmatprep.subr.bf16.mxu1 %v4036_v20  ;;  %v2143_v41 = vmax.f32 %v1985_v18, 0.0  ;;  %v2753_v20 = vld [vmem:[%s5130_s8 + $0x30] sm:$0xff]  ;;  %v2754_v18 = vld [vmem:[%s5130_s8 + $0x38] sm:$0xff] }
 0xb83   :  { %v1989_v23 = vadd.f32 %v1988_v19, %v4641_v46  ;;  %v1990_v40 = vpop.f32.mrb[51].mxu1  ;;  %4039 = vmatpush1.bf16.msra.mxu1 %v4038_v17  ;;  %v2751_v17 = vld [vmem:[%s5130_s8 + $0x20] sm:$0xff] }
 0xb84   :  { %v1991_v42 = vadd.f32 %v1990_v40, %v4641_v46  ;;  %2762 = vperm.xlu1 %4072, %v2748_v12  }
 0xb85   :  { %3029 = vmatmul.mubr.msk.f32.gmra.mrb[34].mxu0 %vm201_vm0, %v4519_v25  ;;  %v2149_v44 = vmax.f32 %v1989_v23, 0.0 }
 0xb86   :  { %1867 = vmatprep.mubr.f32.mxu0 %v4161_v15  ;;  %v2150_v45 = vmax.f32 %v1991_v42, 0.0  ;;  %v1994_v47 = vpop.f32.mrb[52].mxu1 }
 0xb87   :  { %v4042_v48 = vpack.c.bf16 %v2149_v44, %v2142_v21  ;;  %v1995_v49 = vadd.f32 %v1994_v47, %v4647_v6  ;;  %v1996_v50 = vpop.f32.mrb[53].mxu1 }
 0xb88   :  { %v4040_v51 = vpack.c.bf16 %v2150_v45, %v2143_v41  ;;  %v1997_v52 = vadd.f32 %v1996_v50, %v4647_v6  ;;  %2767 = vperm.xlu1 %4072, %v2749_v1  }
 0xb89   :  { %3030 = vmatmul.mubr.msk.f32.gmra.mrb[36].mxu0 %vm201_vm0, %v4533_v28  ;;  %v2156_v58 = vmax.f32 %v1995_v49, 0.0 }
 0xb8a   :  { %1873 = vmatprep.mubr.f32.mxu0 %v4161_v15  ;;  %v2000_v55 = vpop.f32.mrb[54].mxu1  ;;  %4041 = vmatprep.subr.bf16.mxu1 %v4040_v51  ;;  %v2157_v36 = vmax.f32 %v1997_v52, 0.0 }
 0xb8b   :  { %v2001_v59 = vadd.f32 %v2000_v55, %v4650_v13  ;;  %v2002_v61 = vpop.f32.mrb[55].mxu1  ;;  %4043 = vmatpush1.bf16.msra.mxu1 %v4042_v48 }
 0xb8c   :  { %v2003_v62 = vadd.f32 %v2002_v61, %v4650_v13  ;;  %2772 = vperm.xlu1 %4072, %v2750_v8  }
 0xb8d   :  { %3031 = vmatmul.mubr.msk.f32.gmra.mrb[38].mxu0 %vm201_vm0, %v4547_v31  ;;  %v2163_v63 = vmax.f32 %v2001_v59, 0.0 }
 0xb8e   :  { %1879 = vmatprep.mubr.f32.mxu0 %v4161_v15  ;;  %v2164_v22 = vmax.f32 %v2003_v62, 0.0 }
 0xb8f   :  { %v4046_v0 = vpack.c.bf16 %v2163_v63, %v2156_v58 }
 0xb90   :  { %v4044_v4 = vpack.c.bf16 %v2164_v22, %v2157_v36  ;;  %2777 = vperm.xlu1 %4072, %v2751_v17  }
 0xb91   :  { %3032 = vmatmul.mubr.msk.f32.gmra.mrb[40].mxu0 %vm201_vm0, %v4555_v32 }
 0xb92   :  { %1885 = vmatprep.mubr.f32.mxu0 %v4161_v15  ;;  %4045 = vmatprep.subr.bf16.mxu1 %v4044_v4 }
 0xb93   :  { %4047 = vmatpush1.bf16.msra.mxu1 %v4046_v0 }
 0xb94   :  { %2782 = vperm.xlu1 %4072, %v2752_v56  }
 0xb95   :  { %3033 = vmatmul.mubr.msk.f32.gmra.mrb[42].mxu0 %vm201_vm0, %v4563_v33 }
 0xb96   :  { %3066 = vmatmul.mubr.msk.f32.vlgmr.msra.gmra.mrb[72].mxu1 %vm2222_vm1, %v4658_v26  ;;  %3656 = vmatprep.mubr.msk.f32.mxu0 %vm201_vm0, %v4479_v53  ;;  %v2174_v53 = vld [vmem:[%s5129_s7] sm:$0xff] }
 0xb97   :  { %2543 = vmatprep.mubr.f32.mxu1 %v4161_v15  ;;  %2184 = vperm.xlu0 %4071, %v2174_v53  }
 0xb98   :  { %2792 = vperm.xlu1 %4072, %v2754_v18  }
 0xb9a   :  { %3067 = vmatmul.mubr.msk.f32.gmra.mrb[74].mxu1 %vm2222_vm1, %v4666_v27 }
 0xb9b   :  { %2549 = vmatprep.mubr.f32.mxu1 %v4161_v15  ;;  %2194 = vperm.xlu0 %4071, %v2176_v9  }
 0xb9e   :  { %3068 = vmatmul.mubr.msk.f32.gmra.mrb[76].mxu1 %vm2222_vm1, %v4674_v29 }
 0xb9f   :  { %2555 = vmatprep.mubr.f32.mxu1 %v4161_v15  ;;  %2757 = vperm.xlu0 %4071, %v2747_v37  }
 0xba1   :  { %v2313_v19 = vpop.f32.mrb[56].mxu1 }
 0xba2   :  { %3069 = vmatmul.mubr.msk.f32.gmra.mrb[78].mxu1 %vm2222_vm1, %v4682_v30  ;;  %v2315_v21 = vpop.f32.mrb[57].mxu1 }
 0xba3   :  { %2561 = vmatprep.mubr.f32.mxu1 %v4161_v15  ;;  %2204 = vperm.xlu0 %4071, %v2178_v2  }
 0xba5   :  { %v2319_v23 = vpop.f32.mrb[58].mxu1 }
 0xba6   :  { %3070 = vmatmul.mubr.msk.f32.gmra.mrb[80].mxu1 %vm2222_vm1, %v4690_v34  ;;  %v2321_v40 = vpop.f32.mrb[59].mxu1 }
 0xba7   :  { %2567 = vmatprep.mubr.f32.mxu1 %v4161_v15  ;;  %2209 = vperm.xlu0 %4071, %v2179_v5  }
 0xba9   :  { %v2325_v41 = vpop.f32.mrb[60].mxu1 }
 0xbaa   :  { %3071 = vmatmul.mubr.msk.f32.gmra.mrb[82].mxu1 %vm2222_vm1, %v4698_v35  ;;  %v2327_v42 = vpop.f32.mrb[61].mxu1 }
 0xbab   :  { %2573 = vmatprep.mubr.f32.mxu1 %v4161_v15  ;;  %2214 = vperm.xlu0 %4071, %v2180_v14  }
 0xbad   :  { %v4835_v44 = vpop.f32.mrb[62].mxu1 }
 0xbae   :  { %3072 = vmatmul.mubr.msk.f32.gmra.mrb[84].mxu1 %vm2222_vm1, %v4706_v38  ;;  %v4837_v45 = vpop.f32.mrb[63].mxu1 }
 0xbaf   :  { %2579 = vmatprep.mubr.f32.mxu1 %v4161_v15  ;;  %2219 = vperm.xlu0 %4071, %v2181_v3  }
 0xbb1   :  { %v4839_v47 = vpop.f32.mrb[64].mxu1 }
 0xbb2   :  { %3073 = vmatmul.mubr.msk.f32.gmra.mrb[86].mxu1 %vm2222_vm1, %v4714_v39  ;;  %v4841_v48 = vpop.f32.mrb[65].mxu1 }
 0xbb3   :  { %2787 = vperm.xlu0 %4071, %v2753_v20  }
 0xbb5   :  { %v4843_v49 = vpop.f32.mrb[66].mxu1 }
 0xbb6   :  { %v4845_v50 = vpop.f32.mrb[67].mxu1 }
 0xbb9   :  { %v4847_v51 = vpop.f32.mrb[68].mxu1 }
 0xbba   :  { %v4849_v52 = vpop.f32.mrb[69].mxu1 }
 0xbbd   :  { %v4851_v55 = vpop.f32.mrb[70].mxu1 }
 0xbbe   :  { %v4853_v58 = vpop.f32.mrb[71].mxu1 }
 0xbfa   :  { %v4865_v18 = vpop.permute.xlu1 %2189 }
 0xc16   :  { %v4857_v1 = vpop.permute.xlu0 %2184 }
 0xc17   :  { %v2314_v17 = vadd.f32 %v2313_v19, %v4857_v1  ;;  %v2316_v20 = vadd.f32 %v2315_v21, %v4857_v1  ;;  %v2322_v19 = vadd.f32 %v2321_v40, %v4865_v18 }
 0xc44   :  { %v3644_v59 = vpop.f32.mrb[24].mxu0 }
 0xc45   :  { %v1551_v61 = vmax.f32 %v3644_v59, 0.0  ;;  %v1531_v36 = vpop.f32.mrb[25].mxu0 }
 0xc46   :  { %v1550_v62 = vmax.f32 %v1531_v36, 0.0 }
 0xc48   :  { %v3992_v63 = vpack.c.bf16 %v1551_v61, %v1550_v62  ;;  %v3647_v22 = vpop.f32.mrb[26].mxu0  ;;  %v2320_v61 = vadd.f32 %v2319_v23, %v4865_v18  ;;  %v2692_v23 = vmax.f32 %v2316_v20, 0.0 }
 0xc49   :  { %v1553_v0 = vmax.f32 %v3647_v22, 0.0  ;;  %v1541_v4 = vpop.f32.mrb[27].mxu0 }
 0xc4a   :  { %v1552_v53 = vmax.f32 %v1541_v4, 0.0  ;;  %3993 = vmatprep.subr.bf16.mxu0 %v3992_v63  ;;  %v2691_v4 = vmax.f32 %v2314_v17, 0.0  ;;  %v2698_v40 = vmax.f32 %v2320_v61, 0.0 }
 0xc4b   :  { %3995 = vmatpush3.bf16.msra.mxu0 %v3992_v63  ;;  %v4871_v63 = vpop.permute.xlu0 %2194 }
 0xc4c   :  { %v3996_v7 = vpack.c.bf16 %v1553_v0, %v1552_v53  ;;  %v1845_v9 = vpop.f32.mrb[28].mxu0  ;;  %v2326_v21 = vadd.f32 %v2325_v41, %v4871_v63 }
 0xc4d   :  { %v1846_v10 = vadd.f32 %v1845_v9, %v4623_v60  ;;  %v1847_v37 = vpop.f32.mrb[29].mxu0  ;;  %v2699_v9 = vmax.f32 %v2322_v19, 0.0 }
 0xc4e   :  { %3997 = vmatprep.subr.bf16.mxu0 %v3996_v7  ;;  %v1848_v12 = vadd.f32 %v1847_v37, %v4623_v60 }
 0xc4f   :  { %3999 = vmatpush3.bf16.msra.mxu0 %v3996_v7  ;;  %v2112_v5 = vmax.f32 %v1846_v10, 0.0  ;;  %v4878_v7 = vpop.permute.xlu1 %2199  ;;  %v2328_v10 = vadd.f32 %v2327_v42, %v4871_v63  ;;  %v4883_v41 = vpop.permute.xlu0 %2757 }
 0xc50   :  { %v1851_v2 = vpop.f32.mrb[30].mxu0  ;;  %v2113_v3 = vmax.f32 %v1848_v12, 0.0  ;;  %v2334_v17 = vadd.f32 %v4837_v45, %v4878_v7 }
 0xc51   :  { %v1852_v8 = vadd.f32 %v1851_v2, %v4629_v54  ;;  %v1853_v14 = vpop.f32.mrb[31].mxu0 }
 0xc52   :  { %3657 = vmatmul.mubr.msk.f32.vlgmr.msra.gmra.mrb[44].mxu0 %vm201_vm0, %v4491_v57  ;;  %v1854_v56 = vadd.f32 %v1853_v14, %v4629_v54  ;;  %v2795_v14 = vmul.f32 %v4883_v41, %v2691_v4 }
 0xc53   :  { %3659 = vmatprep.mubr.msk.f32.mxu0 %vm201_vm0, %v4499_v16  ;;  %v2119_v59 = vmax.f32 %v1852_v8, 0.0  ;;  %v2332_v8 = vadd.f32 %v4835_v44, %v4878_v7  ;;  %v2706_v44 = vmax.f32 %v2328_v10, 0.0 }
 0xc54   :  { %v2120_v36 = vmax.f32 %v1854_v56, 0.0  ;;  %v1857_v62 = vpop.f32.mrb[32].mxu0  ;;  %v4895_v56 = vpop.permute.xlu1 %2762 }
 0xc55   :  { %v4018_v57 = vpack.c.bf16 %v2119_v59, %v2112_v5  ;;  %v1858_v22 = vadd.f32 %v1857_v62, %v4626_v11  ;;  %v1859_v0 = vpop.f32.mrb[33].mxu0  ;;  %v2705_v5 = vmax.f32 %v2326_v21, 0.0  ;;  %v2802_v59 = vmul.f32 %v4895_v56, %v2698_v40  ;;  %v4901_v62 = vpop.permute.xlu0 %2204 }
 0xc56   :  { %3660 = vmatmul.mubr.msk.f32.gmra.mrb[46].mxu0 %vm201_vm0, %v4519_v25  ;;  %v4016_v16 = vpack.c.bf16 %v2120_v36, %v2113_v3  ;;  %v1860_v53 = vadd.f32 %v1859_v0, %v4626_v11  ;;  %v2796_v3 = vmul.f32 %v4883_v41, %v2692_v23  ;;  %v2803_v61 = vmul.f32 %v4895_v56, %v2699_v9 }
 0xc57   :  { %3662 = vmatprep.mubr.msk.f32.mxu0 %vm201_vm0, %v4533_v28  ;;  %v2126_v37 = vmax.f32 %v1858_v22, 0.0  ;;  %v2851_v22 = vadd.f32 %v2802_v59, %v2795_v14  ;;  %v2338_v21 = vadd.f32 %v4839_v47, %v4901_v62  ;;  %v2712_v23 = vmax.f32 %v2332_v8, 0.0 }
 0xc58   :  { %v1863_v12 = vpop.f32.mrb[34].mxu0  ;;  %4017 = vmatprep.subr.bf16.mxu0 %v4016_v16  ;;  %v2127_v28 = vmax.f32 %v1860_v53, 0.0  ;;  %v2864_v0 = vadd.f32 %v2803_v61, %v2796_v3  ;;  %v2340_v16 = vadd.f32 %v4841_v48, %v4901_v62  ;;  %v4911_v53 = vpop.permute.xlu1 %2767  ;;  %v2713_v40 = vmax.f32 %v2334_v17, 0.0 }
 0xc59   :  { %v1864_v25 = vadd.f32 %v1863_v12, %v4633_v24  ;;  %v1865_v2 = vpop.f32.mrb[35].mxu0  ;;  %4019 = vmatpush1.bf16.msra.mxu0 %v4018_v57  ;;  %v2809_v9 = vmul.f32 %v4911_v53, %v2705_v5  ;;  %v2810_v10 = vmul.f32 %v4911_v53, %v2706_v44  ;;  %v4916_v12 = vpop.permute.xlu0 %2209  ;;  %v2719_v8 = vmax.f32 %v2338_v21, 0.0 }
 0xc5a   :  { %3663 = vmatmul.mubr.msk.f32.gmra.mrb[48].mxu0 %vm201_vm0, %v4547_v31  ;;  %v1866_v42 = vadd.f32 %v1865_v2, %v4633_v24  ;;  %v2344_v5 = vadd.f32 %v4843_v49, %v4916_v12 }
 0xc5b   :  { %3665 = vmatprep.mubr.msk.f32.mxu0 %vm201_vm0, %v4555_v32  ;;  %v2133_v20 = vmax.f32 %v1864_v25, 0.0  ;;  %v2852_v48 = vadd.f32 %v2851_v22, %v2809_v9  ;;  %v2865_v14 = vadd.f32 %v2864_v0, %v2810_v10 }
 0xc5c   :  { %v2134_v31 = vmax.f32 %v1866_v42, 0.0  ;;  %v1869_v36 = vpop.f32.mrb[36].mxu0  ;;  %v2720_v42 = vmax.f32 %v2340_v16, 0.0  ;;  %v4922_v17 = vpop.permute.xlu1 %2772  ;;  %v2726_v16 = vmax.f32 %v2344_v5, 0.0 }
 0xc5d   :  { %v4022_v19 = vpack.c.bf16 %v2133_v20, %v2126_v37  ;;  %v1870_v45 = vadd.f32 %v1869_v36, %v4639_v43  ;;  %v1871_v57 = vpop.f32.mrb[37].mxu0  ;;  %v2346_v20 = vadd.f32 %v4845_v50, %v4916_v12  ;;  %v2816_v44 = vmul.f32 %v4922_v17, %v2712_v23  ;;  %v4928_v36 = vpop.permute.xlu0 %2214 }
 0xc5e   :  { %3666 = vmatmul.mubr.msk.f32.gmra.mrb[50].mxu0 %vm201_vm0, %v4563_v33  ;;  %v4020_v32 = vpack.c.bf16 %v2134_v31, %v2127_v28  ;;  %v1872_v4 = vadd.f32 %v1871_v57, %v4639_v43  ;;  %v2817_v59 = vmul.f32 %v4922_v17, %v2713_v40  ;;  %v2350_v50 = vadd.f32 %v4847_v51, %v4928_v36 }
 0xc5f   :  { %2424 = vmatprep.mubr.f32.mxu0 %v4161_v15  ;;  %v2140_v33 = vmax.f32 %v1870_v45, 0.0  ;;  %v2853_v22 = vadd.f32 %v2852_v48, %v2816_v44  ;;  %v2352_v21 = vadd.f32 %v4849_v52, %v4928_v36  ;;  %v2727_v23 = vmax.f32 %v2346_v20, 0.0 }
 0xc60   :  { %v1875_v37 = vpop.f32.mrb[38].mxu0  ;;  %4021 = vmatprep.subr.bf16.mxu0 %v4020_v32  ;;  %v2141_v25 = vmax.f32 %v1872_v4, 0.0  ;;  %v2866_v49 = vadd.f32 %v2865_v14, %v2817_v59  ;;  %v4932_v4 = vpop.permute.xlu1 %2777 }
 0xc61   :  { %v1876_v47 = vadd.f32 %v1875_v37, %v4641_v46  ;;  %v1877_v2 = vpop.f32.mrb[39].mxu0  ;;  %4023 = vmatpush1.bf16.msra.mxu0 %v4022_v19  ;;  %v2823_v40 = vmul.f32 %v4932_v4, %v2719_v8  ;;  %v2824_v9 = vmul.f32 %v4932_v4, %v2720_v42  ;;  %v4940_v37 = vpop.permute.xlu0 %2219 }
 0xc62   :  { %v1878_v28 = vadd.f32 %v1877_v2, %v4641_v46  ;;  %v2358_v44 = vadd.f32 %v4853_v58, %v4940_v37 }
 0xc63   :  { %v2147_v3 = vmax.f32 %v1876_v47, 0.0  ;;  %v2734_v47 = vmax.f32 %v2352_v21, 0.0  ;;  %v2854_v14 = vadd.f32 %v2853_v22, %v2823_v40  ;;  %v2867_v52 = vadd.f32 %v2866_v49, %v2824_v9 }
 0xc64   :  { %v2148_v61 = vmax.f32 %v1878_v28, 0.0  ;;  %v1881_v31 = vpop.f32.mrb[40].mxu0  ;;  %v2356_v28 = vadd.f32 %v4851_v55, %v4940_v37  ;;  %v4947_v20 = vpop.permute.xlu1 %2782  ;;  %v2741_v49 = vmax.f32 %v2358_v44, 0.0 }
 0xc65   :  { %v4026_v19 = vpack.c.bf16 %v2147_v3, %v2140_v33  ;;  %v1882_v45 = vadd.f32 %v1881_v31, %v4647_v6  ;;  %v1883_v57 = vpop.f32.mrb[41].mxu0  ;;  %v2830_v31 = vmul.f32 %v4947_v20, %v2726_v16 }
 0xc66   :  { %v4024_v0 = vpack.c.bf16 %v2148_v61, %v2141_v25  ;;  %v1884_v32 = vadd.f32 %v1883_v57, %v4647_v6  ;;  %v2733_v25 = vmax.f32 %v2350_v50, 0.0  ;;  %v4954_v57 = vpop.permute.xlu0 %2787  ;;  %v2740_v22 = vmax.f32 %v2356_v28, 0.0 }
 0xc67   :  { %v2154_v10 = vmax.f32 %v1882_v45, 0.0  ;;  %v2838_v58 = vmul.f32 %v4954_v57, %v2734_v47  ;;  %v2855_v16 = vadd.f32 %v2854_v14, %v2830_v31 }
 0xc68   :  { %v1887_v33 = vpop.f32.mrb[42].mxu0  ;;  %4025 = vmatprep.subr.bf16.mxu0 %v4024_v0  ;;  %v2155_v8 = vmax.f32 %v1884_v32, 0.0  ;;  %v2837_v21 = vmul.f32 %v4954_v57, %v2733_v25 }
 0xc69   :  { %v1888_v2 = vadd.f32 %v1887_v33, %v4650_v13  ;;  %v1889_v48 = vpop.f32.mrb[43].mxu0  ;;  %4027 = vmatpush1.bf16.msra.mxu0 %v4026_v19  ;;  %v2539_v51 = vpop.f32.mrb[72].mxu1  ;;  %v2831_v19 = vmul.f32 %v4947_v20, %v2727_v23 }
 0xc6a   :  { %v1890_v42 = vadd.f32 %v1889_v48, %v4650_v13  ;;  %v2540_v5 = vadd.f32 %v2539_v51, %v4857_v1  ;;  %v2541_v3 = vpop.f32.mrb[73].mxu1 }
 0xc6b   :  { %v2161_v59 = vmax.f32 %v1888_v2, 0.0  ;;  %v2542_v61 = vadd.f32 %v2541_v3, %v4857_v1  ;;  %v4959_v2 = vpop.permute.xlu1 %2792  ;;  %v2868_v48 = vadd.f32 %v2867_v52, %v2831_v19 }
 0xc6c   :  { %v2162_v45 = vmax.f32 %v1890_v42, 0.0  ;;  %v2695_v55 = vmax.f32 %v2540_v5, 0.0  ;;  %v2844_v51 = vmul.f32 %v4959_v2, %v2740_v22  ;;  %v2856_v42 = vadd.f32 %v2855_v16, %v2837_v21 }
 0xc6d   :  { %v4030_v0 = vpack.c.bf16 %v2161_v59, %v2154_v10  ;;  %v2696_v32 = vmax.f32 %v2542_v61, 0.0  ;;  %v2545_v50 = vpop.f32.mrb[74].mxu1  ;;  %v2845_v25 = vmul.f32 %v4959_v2, %v2741_v49  ;;  %v2869_v14 = vadd.f32 %v2868_v48, %v2838_v58 }
 0xc6e   :  { %v4028_v40 = vpack.c.bf16 %v2162_v45, %v2155_v8  ;;  %v2546_v9 = vadd.f32 %v2545_v50, %v4865_v18  ;;  %v2547_v33 = vpop.f32.mrb[75].mxu1  ;;  %v2799_v10 = vmul.f32 %v4883_v41, %v2695_v55  ;;  %v2857_v59 = vadd.f32 %v2856_v42, %v2844_v51 }
 0xc6f   :  { %v2548_v23 = vadd.f32 %v2547_v33, %v4865_v18  ;;  %v2800_v47 = vmul.f32 %v4883_v41, %v2696_v32  ;;  %v2870_v19 = vadd.f32 %v2869_v14, %v2845_v25 }
 0xc70   :  { %4029 = vmatprep.subr.bf16.mxu0 %v4028_v40  ;;  %v2702_v28 = vmax.f32 %v2546_v9, 0.0  ;;  %v2858_v22 = vrot.slane %v2857_v59, 4 }
 0xc71   :  { %4031 = vmatpush1.bf16.msra.mxu0 %v4030_v0  ;;  %v2703_v8 = vmax.f32 %v2548_v23, 0.0  ;;  %v2551_v5 = vpop.f32.mrb[76].mxu1  ;;  %v2871_v50 = vrot.slane %v2870_v19, 4 }
 0xc72   :  { %v2806_v3 = vmul.f32 %v4895_v56, %v2702_v28  ;;  %v2552_v44 = vadd.f32 %v2551_v5, %v4871_v63  ;;  %v2553_v52 = vpop.f32.mrb[77].mxu1  ;;  %v2859_v9 = vadd.f32 %v2858_v22, %v2857_v59 }
 0xc73   :  { %v2807_v61 = vmul.f32 %v4895_v56, %v2703_v8  ;;  %v2554_v31 = vadd.f32 %v2553_v52, %v4871_v63  ;;  %v2872_v23 = vadd.f32 %v2871_v50, %v2870_v19 }
 0xc74   :  { %3058 = vmatmul.mubr.msk.f32.vlgmr.msra.gmra.mrb[52].mxu0 %vm2222_vm1, %v4658_v26  ;;  %v2903_v45 = vadd.f32 %v2806_v3, %v2799_v10  ;;  %v2709_v55 = vmax.f32 %v2552_v44, 0.0  ;;  %v2860_v10 = vrot.slane %v2859_v9, 2 }
 0xc75   :  { %2430 = vmatprep.mubr.f32.mxu0 %v4161_v15  ;;  %v2916_v49 = vadd.f32 %v2807_v61, %v2800_v47  ;;  %v2710_v0 = vmax.f32 %v2554_v31, 0.0  ;;  %v2557_v32 = vpop.f32.mrb[78].mxu1  ;;  %v2873_v47 = vrot.slane %v2872_v23, 2 }
 0xc76   :  { %v2813_v21 = vmul.f32 %v4911_v53, %v2709_v55  ;;  %v2558_v58 = vadd.f32 %v2557_v32, %v4878_v7  ;;  %v2559_v40 = vpop.f32.mrb[79].mxu1  ;;  %v2861_v3 = vadd.f32 %v2860_v10, %v2859_v9 }
 0xc77   :  { %v2814_v33 = vmul.f32 %v4911_v53, %v2710_v0  ;;  %v2560_v16 = vadd.f32 %v2559_v40, %v4878_v7  ;;  %v2874_v59 = vadd.f32 %v2873_v47, %v2872_v23 }
 0xc78   :  { %3059 = vmatmul.mubr.msk.f32.gmra.mrb[54].mxu0 %vm2222_vm1, %v4666_v27  ;;  %v2904_v48 = vadd.f32 %v2903_v45, %v2813_v21  ;;  %v2716_v51 = vmax.f32 %v2558_v58, 0.0  ;;  %v2862_v19 = vrot.slane %v2861_v3, 1  ;;  %v4992_v21 = vstv %s5131_s9  ;;  %s4163_s9 = smov [#allocation9]  }
 0xc79   :  { %2436 = vmatprep.mubr.f32.mxu0 %v4161_v15  ;;  %v2917_v28 = vadd.f32 %v2916_v49, %v2814_v33  ;;  %v2717_v42 = vmax.f32 %v2560_v16, 0.0  ;;  %v2563_v25 = vpop.f32.mrb[80].mxu1  ;;  %v2875_v49 = vrot.slane %v2874_v59, 1  ;;  %s2964_s4 = sshll.u32 %s4163_s9, 4  ;;  %s2965_s4 = int_to_ptr.vmem [resolvable:$true] %s2964_s4 }
 0xc7a   :  { %v2820_v8 = vmul.f32 %v4922_v17, %v2716_v51  ;;  %v2564_v5 = vadd.f32 %v2563_v25, %v4901_v62  ;;  %v2565_v14 = vpop.f32.mrb[81].mxu1  ;;  %v2863_v58 = vadd.f32 %v2862_v19, %v2861_v3  ;;  %s4129_s28 = scalar_lea.vmem %s2965_s4, 16  ;;  %s4133_s29 = scalar_lea.vmem %s2965_s4, 32 }
 0xc7b   :  { %v2821_v44 = vmul.f32 %v4922_v17, %v2717_v42  ;;  %v2566_v52 = vadd.f32 %v2565_v14, %v4901_v62  ;;  %v2876_v33 = vadd.f32 %v2875_v49, %v2874_v59  ;;  %p4130_p2 = scmp.ne.s32.totalorder %s2965_s4, %s4129_s28  ;;  %p4134_p3 = scmp.lt.s32.totalorder %s2965_s4, %s2965_s4 }
 0xc7c   :  { %3060 = vmatmul.mubr.msk.f32.gmra.mrb[56].mxu0 %vm2222_vm1, %v4674_v29  ;;  %v2905_v61 = vadd.f32 %v2904_v48, %v2820_v8  ;;  %v2723_v31 = vmax.f32 %v2564_v5, 0.0  ;;  %v2944_v48 = vadd.f32 %v4992_v21, %v2863_v58  ;;  %p4135_p4 = scmp.lt.s32.totalorder %s4133_s29, %s4129_s28 }
 0xc7d   :  { %2442 = vmatprep.mubr.f32.mxu0 %v4161_v15  ;;  %v2918_v45 = vadd.f32 %v2917_v28, %v2821_v44  ;;  %v2724_v55 = vmax.f32 %v2566_v52, 0.0  ;;  %v2569_v22 = vpop.f32.mrb[82].mxu1  ;;  %v2945_v42 = vadd.f32 %v4992_v21, %v2876_v33 }
 0xc7e   :  { %v2570_v0 = vadd.f32 %v2569_v22, %v4916_v12  ;;  %v2827_v32 = vmul.f32 %v4932_v4, %v2723_v31  ;;  %v2571_v50 = vpop.f32.mrb[83].mxu1  ;;  %p4136_p5 = por %p4135_p4, %p4134_p3 }
 0xc7f   :  { %v2828_v40 = vmul.f32 %v4932_v4, %v2724_v55  ;;  %v2572_v9 = vadd.f32 %v2571_v50, %v4916_v12  ;;  %v5005_v3 = vadd.f32 %v2945_v42, %v2944_v48 }
 0xc80   :  { %3061 = vmatmul.mubr.msk.f32.gmra.mrb[58].mxu0 %vm2222_vm1, %v4682_v30  ;;  %v2730_v16 = vmax.f32 %v2570_v0, 0.0  ;;  %v2906_v23 = vadd.f32 %v2905_v61, %v2827_v32  ;;  %p4137_p6 = pnand %p4136_p5, %p4130_p2 }
 0xc81   :  { %2448 = vmatprep.mubr.f32.mxu0 %v4161_v15  ;;  %v2919_v51 = vadd.f32 %v2918_v45, %v2828_v40  ;;  %v2731_v10 = vmax.f32 %v2572_v9, 0.0  ;;  %v2575_v28 = vpop.f32.mrb[84].mxu1 }
 0xc82   :  { %v2576_v25 = vadd.f32 %v2575_v28, %v4928_v36  ;;  %v2577_v47 = vpop.f32.mrb[85].mxu1  ;;  %v2834_v8 = vmul.f32 %v4947_v20, %v2730_v16 }
 0xc83   :  { %v2578_v5 = vadd.f32 %v2577_v47, %v4928_v36  ;;  %v2835_v14 = vmul.f32 %v4947_v20, %v2731_v10 }
 0xc84   :  { %3062 = vmatmul.mubr.msk.f32.gmra.mrb[60].mxu0 %vm2222_vm1, %v4690_v34  ;;  %v2737_v44 = vmax.f32 %v2576_v25, 0.0  ;;  %v2907_v52 = vadd.f32 %v2906_v23, %v2834_v8 }
 0xc85   :  { %2454 = vmatprep.mubr.f32.mxu0 %v4161_v15  ;;  %v2738_v59 = vmax.f32 %v2578_v5, 0.0  ;;  %v2581_v61 = vpop.f32.mrb[86].mxu1  ;;  %v2920_v31 = vadd.f32 %v2919_v51, %v2835_v14 }
 0xc86   :  { %v2582_v19 = vadd.f32 %v2581_v61, %v4940_v37  ;;  %v2583_v45 = vpop.f32.mrb[87].mxu1  ;;  %v2841_v55 = vmul.f32 %v4954_v57, %v2737_v44 }
 0xc87   :  { %v2584_v22 = vadd.f32 %v2583_v45, %v4940_v37  ;;  %v2842_v49 = vmul.f32 %v4954_v57, %v2738_v59 }
 0xc88   :  { %3063 = vmatmul.mubr.msk.f32.gmra.mrb[62].mxu0 %vm2222_vm1, %v4698_v35  ;;  %v2744_v0 = vmax.f32 %v2582_v19, 0.0  ;;  %v2908_v32 = vadd.f32 %v2907_v52, %v2841_v55 }
 0xc89   :  { %2460 = vmatprep.mubr.f32.mxu0 %v4161_v15  ;;  %v2745_v50 = vmax.f32 %v2584_v22, 0.0  ;;  %v2921_v58 = vadd.f32 %v2920_v31, %v2842_v49 }
 0xc8a   :  { %v2848_v40 = vmul.f32 %v4959_v2, %v2744_v0 }
 0xc8b   :  { %v2849_v9 = vmul.f32 %v4959_v2, %v2745_v50 }
 0xc8c   :  { %3064 = vmatmul.mubr.msk.f32.gmra.mrb[64].mxu0 %vm2222_vm1, %v4706_v38  ;;  %v5021_v33 = vadd.f32 %v2908_v32, %v2848_v40 }
 0xc8d   :  { %2466 = vmatprep.mubr.f32.mxu0 %v4161_v15  ;;  %v5024_v16 = vadd.f32 %v2921_v58, %v2849_v9 }
 0xc90   :  { %3065 = vmatmul.mubr.msk.f32.gmra.mrb[66].mxu0 %vm2222_vm1, %v4714_v39 }
 0xc91   :  { %3684 = vmatprep.mubr.msk.f32.mxu0 %vm2222_vm1, %v4658_v26 }
 0xd25   :  { %v3658_v23 = vpop.f32.mrb[44].mxu0 }
 0xd26   :  { %v2077_v48 = vadd.f32 %v3658_v23, %v4629_v54  ;;  %v2071_v51 = vpop.f32.mrb[45].mxu0 }
 0xd27   :  { %v2072_v10 = vadd.f32 %v2071_v51, %v4623_v60 }
 0xd28   :  { %v2123_v28 = vmax.f32 %v2077_v48, 0.0 }
 0xd29   :  { %v2116_v42 = vmax.f32 %v2072_v10, 0.0  ;;  %v3661_v25 = vpop.f32.mrb[46].mxu0 }
 0xd2a   :  { %v2087_v47 = vadd.f32 %v3661_v25, %v4633_v24  ;;  %v2081_v15 = vpop.f32.mrb[47].mxu0 }
 0xd2b   :  { %v4048_v8 = vpack.c.bf16 %v2123_v28, %v2116_v42  ;;  %v2082_v5 = vadd.f32 %v2081_v15, %v4626_v11 }
 0xd2c   :  { %v2137_v14 = vmax.f32 %v2087_v47, 0.0 }
 0xd2d   :  { %v2130_v44 = vmax.f32 %v2082_v5, 0.0  ;;  %v3664_v52 = vpop.f32.mrb[48].mxu0  ;;  %4049 = vmatprep.subr.bf16.mxu0 %v4048_v8 }
 0xd2e   :  { %v2097_v26 = vadd.f32 %v3664_v52, %v4641_v46  ;;  %v2091_v59 = vpop.f32.mrb[49].mxu0  ;;  %4051 = vmatpush3.bf16.msra.mxu0 %v4048_v8 }
 0xd2f   :  { %v4052_v54 = vpack.c.bf16 %v2137_v14, %v2130_v44  ;;  %v2092_v60 = vadd.f32 %v2091_v59, %v4639_v43 }
 0xd30   :  { %v2151_v61 = vmax.f32 %v2097_v26, 0.0 }
 0xd31   :  { %v2144_v31 = vmax.f32 %v2092_v60, 0.0  ;;  %v3667_v19 = vpop.f32.mrb[50].mxu0  ;;  %4053 = vmatprep.subr.bf16.mxu0 %v4052_v54 }
 0xd32   :  { %v2107_v24 = vadd.f32 %v3667_v19, %v4650_v13  ;;  %v2101_v45 = vpop.f32.mrb[51].mxu0  ;;  %4055 = vmatpush3.bf16.msra.mxu0 %v4052_v54 }
 0xd33   :  { %v4056_v11 = vpack.c.bf16 %v2151_v61, %v2144_v31  ;;  %v2102_v55 = vadd.f32 %v2101_v45, %v4647_v6 }
 0xd34   :  { %v2165_v22 = vmax.f32 %v2107_v24, 0.0 }
 0xd35   :  { %v2158_v49 = vmax.f32 %v2102_v55, 0.0  ;;  %4057 = vmatprep.subr.bf16.mxu0 %v4056_v11 }
 0xd36   :  { %4059 = vmatpush3.bf16.msra.mxu0 %v4056_v11 }
 0xd37   :  { %v4060_v46 = vpack.c.bf16 %v2165_v22, %v2158_v49 }
 0xd39   :  { %4061 = vmatprep.subr.bf16.mxu0 %v4060_v46 }
 0xd3a   :  { %4063 = vmatpush3.bf16.msra.mxu0 %v4060_v46 }
 0xd3d   :  { %3685 = vmatmul.mubr.msk.f32.vlgmr.msra.gmra.mrb[68].mxu0 %vm2222_vm1, %v4666_v27 }
 0xd3e   :  { %3687 = vmatprep.mubr.msk.f32.mxu0 %vm2222_vm1, %v4674_v29 }
 0xd41   :  { %3688 = vmatmul.mubr.msk.f32.gmra.mrb[70].mxu0 %vm2222_vm1, %v4682_v30 }
 0xd42   :  { %3690 = vmatprep.mubr.msk.f32.mxu0 %vm2222_vm1, %v4690_v34 }
 0xd45   :  { %3691 = vmatmul.mubr.msk.f32.gmra.mrb[72].mxu0 %vm2222_vm1, %v4698_v35 }
 0xd46   :  { %3693 = vmatprep.mubr.msk.f32.mxu0 %vm2222_vm1, %v4706_v38 }
 0xd47   :  { %v2426_v43 = vpop.f32.mrb[52].mxu0 }
 0xd48   :  { %v2427_v6 = vadd.f32 %v2426_v43, %v4857_v1  ;;  %v2428_v13 = vpop.f32.mrb[53].mxu0 }
 0xd49   :  { %v2429_v27 = vadd.f32 %v2428_v13, %v4857_v1  ;;  %3694 = vmatmul.mubr.msk.f32.gmra.mrb[74].mxu0 %vm2222_vm1, %v4714_v39 }
 0xd4a   :  { %v2693_v30 = vmax.f32 %v2427_v6, 0.0 }
 0xd4b   :  { %v2432_v29 = vpop.f32.mrb[54].mxu0  ;;  %v2694_v32 = vmax.f32 %v2429_v27, 0.0 }
 0xd4c   :  { %v2433_v0 = vadd.f32 %v2432_v29, %v4865_v18  ;;  %v2434_v34 = vpop.f32.mrb[55].mxu0  ;;  %v2797_v40 = vmul.f32 %v4883_v41, %v2693_v30 }
 0xd4d   :  { %v2435_v35 = vadd.f32 %v2434_v34, %v4865_v18  ;;  %v2798_v39 = vmul.f32 %v4883_v41, %v2694_v32 }
 0xd4e   :  { %v2700_v50 = vmax.f32 %v2433_v0, 0.0 }
 0xd4f   :  { %v2701_v58 = vmax.f32 %v2435_v35, 0.0  ;;  %v2438_v38 = vpop.f32.mrb[56].mxu0 }
 0xd50   :  { %v2804_v9 = vmul.f32 %v4895_v56, %v2700_v50  ;;  %v2439_v23 = vadd.f32 %v2438_v38, %v4871_v63  ;;  %v2440_v48 = vpop.f32.mrb[57].mxu0 }
 0xd51   :  { %v2805_v51 = vmul.f32 %v4895_v56, %v2701_v58  ;;  %v2441_v10 = vadd.f32 %v2440_v48, %v4871_v63 }
 0xd52   :  { %v2877_v28 = vadd.f32 %v2804_v9, %v2797_v40  ;;  %v2707_v42 = vmax.f32 %v2439_v23, 0.0 }
 0xd53   :  { %v2890_v25 = vadd.f32 %v2805_v51, %v2798_v39  ;;  %v2708_v47 = vmax.f32 %v2441_v10, 0.0  ;;  %v2444_v15 = vpop.f32.mrb[58].mxu0 }
 0xd54   :  { %v2811_v8 = vmul.f32 %v4911_v53, %v2707_v42  ;;  %v2445_v5 = vadd.f32 %v2444_v15, %v4878_v7  ;;  %v2446_v14 = vpop.f32.mrb[59].mxu0  ;;  %v2910_v42 = vrot.slane %v5021_v33, 4 }
 0xd55   :  { %v2812_v44 = vmul.f32 %v4911_v53, %v2708_v47  ;;  %v2447_v52 = vadd.f32 %v2446_v14, %v4878_v7 }
 0xd56   :  { %v2878_v26 = vadd.f32 %v2877_v28, %v2811_v8  ;;  %v2714_v59 = vmax.f32 %v2445_v5, 0.0 }
 0xd57   :  { %v2891_v54 = vadd.f32 %v2890_v25, %v2812_v44  ;;  %v2715_v60 = vmax.f32 %v2447_v52, 0.0  ;;  %v2450_v61 = vpop.f32.mrb[60].mxu0  ;;  %v2923_v52 = vrot.slane %v5024_v16, 4 }
 0xd58   :  { %v2818_v31 = vmul.f32 %v4922_v17, %v2714_v59  ;;  %v2451_v19 = vadd.f32 %v2450_v61, %v4901_v62  ;;  %v2452_v24 = vpop.f32.mrb[61].mxu0 }
 0xd59   :  { %v2819_v45 = vmul.f32 %v4922_v17, %v2715_v60  ;;  %v2453_v11 = vadd.f32 %v2452_v24, %v4901_v62  ;;  %v2911_v60 = vadd.f32 %v2910_v42, %v5021_v33 }
 0xd5a   :  { %v2879_v55 = vadd.f32 %v2878_v26, %v2818_v31  ;;  %v2721_v22 = vmax.f32 %v2451_v19, 0.0  ;;  %v2924_v19 = vadd.f32 %v2923_v52, %v5024_v16 }
 0xd5b   :  { %v2892_v49 = vadd.f32 %v2891_v54, %v2819_v45  ;;  %v2722_v46 = vmax.f32 %v2453_v11, 0.0  ;;  %v2456_v43 = vpop.f32.mrb[62].mxu0  ;;  %v2912_v11 = vrot.slane %v2911_v60, 2 }
 0xd5c   :  { %v2825_v6 = vmul.f32 %v4932_v4, %v2721_v22  ;;  %v2457_v13 = vadd.f32 %v2456_v43, %v4916_v12  ;;  %v2458_v27 = vpop.f32.mrb[63].mxu0 }
 0xd5d   :  { %v2826_v29 = vmul.f32 %v4932_v4, %v2722_v46  ;;  %v2459_v30 = vadd.f32 %v2458_v27, %v4916_v12 }
 0xd5e   :  { %v2880_v0 = vadd.f32 %v2879_v55, %v2825_v6  ;;  %v2728_v34 = vmax.f32 %v2457_v13, 0.0  ;;  %v2913_v6 = vadd.f32 %v2912_v11, %v2911_v60 }
 0xd5f   :  { %v2893_v32 = vadd.f32 %v2892_v49, %v2826_v29  ;;  %v2729_v35 = vmax.f32 %v2459_v30, 0.0  ;;  %v2462_v50 = vpop.f32.mrb[64].mxu0  ;;  %v2925_v49 = vrot.slane %v2924_v19, 2 }
 0xd60   :  { %v2832_v58 = vmul.f32 %v4947_v20, %v2728_v34  ;;  %v2463_v38 = vadd.f32 %v2462_v50, %v4928_v36  ;;  %v2464_v40 = vpop.f32.mrb[65].mxu0  ;;  %v2914_v33 = vrot.slane %v2913_v6, 1 }
 0xd61   :  { %v2833_v9 = vmul.f32 %v4947_v20, %v2729_v35  ;;  %v2465_v23 = vadd.f32 %v2464_v40, %v4928_v36  ;;  %v2926_v29 = vadd.f32 %v2925_v49, %v2924_v19 }
 0xd62   :  { %v2881_v48 = vadd.f32 %v2880_v0, %v2832_v58  ;;  %v2735_v39 = vmax.f32 %v2463_v38, 0.0  ;;  %v2915_v58 = vadd.f32 %v2914_v33, %v2913_v6 }
 0xd63   :  { %v2894_v51 = vadd.f32 %v2893_v32, %v2833_v9  ;;  %v2736_v10 = vmax.f32 %v2465_v23, 0.0  ;;  %v2468_v28 = vpop.f32.mrb[66].mxu0  ;;  %v2927_v35 = vrot.slane %v2926_v29, 1 }
 0xd64   :  { %v2839_v25 = vmul.f32 %v4954_v57, %v2735_v39  ;;  %v2469_v47 = vadd.f32 %v2468_v28, %v4940_v37  ;;  %v2470_v15 = vpop.f32.mrb[67].mxu0  ;;  %v2948_v23 = vadd.f32 %v4992_v21, %v2915_v58 }
 0xd65   :  { %v2840_v8 = vmul.f32 %v4954_v57, %v2736_v10  ;;  %v2471_v5 = vadd.f32 %v2470_v15, %v4940_v37  ;;  %v2928_v40 = vadd.f32 %v2927_v35, %v2926_v29 }
 0xd66   :  { %v2882_v14 = vadd.f32 %v2881_v48, %v2839_v25  ;;  %v2742_v44 = vmax.f32 %v2469_v47, 0.0 }
 0xd67   :  { %v2895_v26 = vadd.f32 %v2894_v51, %v2840_v8  ;;  %v2743_v59 = vmax.f32 %v2471_v5, 0.0  ;;  %v2949_v39 = vadd.f32 %v4992_v21, %v2928_v40 }
 0xd68   :  { %v2846_v54 = vmul.f32 %v4959_v2, %v2742_v44 }
 0xd69   :  { %v2847_v61 = vmul.f32 %v4959_v2, %v2743_v59 }
 0xd6a   :  { %v2883_v31 = vadd.f32 %v2882_v14, %v2846_v54 }
 0xd6b   :  { %v2896_v24 = vadd.f32 %v2895_v26, %v2847_v61 }
 0xd6c   :  { %v2884_v45 = vrot.slane %v2883_v31, 4 }
 0xd6d   :  { %v2897_v55 = vrot.slane %v2896_v24, 4 }
 0xd6e   :  { %v2885_v22 = vadd.f32 %v2884_v45, %v2883_v31 }
 0xd6f   :  { %v2898_v46 = vadd.f32 %v2897_v55, %v2896_v24 }
 0xd70   :  { %v2886_v43 = vrot.slane %v2885_v22, 2 }
 0xd71   :  { %v2899_v13 = vrot.slane %v2898_v46, 2 }
 0xd72   :  { %v2887_v27 = vadd.f32 %v2886_v43, %v2885_v22 }
 0xd73   :  { %v2900_v30 = vadd.f32 %v2899_v13, %v2898_v46 }
 0xd74   :  { %v2888_v0 = vrot.slane %v2887_v27, 1 }
 0xd75   :  { %v2901_v34 = vrot.slane %v2900_v30, 1 }
 0xd76   :  { %v2889_v32 = vadd.f32 %v2888_v0, %v2887_v27 }
 0xd77   :  { %v2902_v50 = vadd.f32 %v2901_v34, %v2900_v30 }
 0xd78   :  { %v2946_v16 = vadd.f32 %v4992_v21, %v2889_v32 }
 0xd79   :  { %v2947_v38 = vadd.f32 %v4992_v21, %v2902_v50 }
 0xd7a   :  { %v2952_v9 = vadd.f32 %v5005_v3, %v2946_v16 }
 0xd7c   :  { %v2953_v48 = vadd.f32 %v2952_v9, %v2947_v38 }
 0xd7e   :  { %v2954_v51 = vadd.f32 %v2953_v48, %v2948_v23 }
 0xd80   :  { %v2955_v10 = vadd.f32 %v2954_v51, %v2949_v39 }
 0xe10   :  { %v3686_v28 = vpop.f32.mrb[68].mxu0 }
 0xe11   :  { %v2658_v42 = vadd.f32 %v3686_v28, %v4865_v18  ;;  %v2652_v25 = vpop.f32.mrb[69].mxu0 }
 0xe12   :  { %v2653_v47 = vadd.f32 %v2652_v25, %v4857_v1 }
 0xe13   :  { %v2704_v15 = vmax.f32 %v2658_v42, 0.0 }
 0xe14   :  { %v2697_v8 = vmax.f32 %v2653_v47, 0.0  ;;  %v3689_v5 = vpop.f32.mrb[70].mxu0 }
 0xe15   :  { %v2808_v14 = vmul.f32 %v4895_v56, %v2704_v15  ;;  %v2668_v3 = vadd.f32 %v3689_v5, %v4878_v7  ;;  %v2662_v44 = vpop.f32.mrb[71].mxu0 }
 0xe16   :  { %v2801_v52 = vmul.f32 %v4883_v41, %v2697_v8  ;;  %v2663_v26 = vadd.f32 %v2662_v44, %v4871_v63 }
 0xe17   :  { %v2718_v54 = vmax.f32 %v2668_v3, 0.0 }
 0xe18   :  { %v2929_v59 = vadd.f32 %v2808_v14, %v2801_v52  ;;  %v2711_v60 = vmax.f32 %v2663_v26, 0.0  ;;  %v3692_v61 = vpop.f32.mrb[72].mxu0 }
 0xe19   :  { %v2678_v18 = vadd.f32 %v3692_v61, %v4916_v12  ;;  %v2672_v31 = vpop.f32.mrb[73].mxu0  ;;  %v2822_v56 = vmul.f32 %v4922_v17, %v2718_v54 }
 0xe1a   :  { %v2815_v1 = vmul.f32 %v4911_v53, %v2711_v60  ;;  %v2673_v19 = vadd.f32 %v2672_v31, %v4901_v62 }
 0xe1b   :  { %v2732_v7 = vmax.f32 %v2678_v18, 0.0 }
 0xe1c   :  { %v2930_v24 = vadd.f32 %v2929_v59, %v2815_v1  ;;  %v2725_v45 = vmax.f32 %v2673_v19, 0.0  ;;  %v3695_v11 = vpop.f32.mrb[74].mxu0 }
 0xe1d   :  { %v2688_v41 = vadd.f32 %v3695_v11, %v4940_v37  ;;  %v2682_v63 = vpop.f32.mrb[75].mxu0  ;;  %v2836_v12 = vmul.f32 %v4947_v20, %v2732_v7 }
 0xe1e   :  { %v2829_v55 = vmul.f32 %v4932_v4, %v2725_v45  ;;  %v2931_v22 = vadd.f32 %v2930_v24, %v2822_v56  ;;  %v2683_v49 = vadd.f32 %v2682_v63, %v4928_v36 }
 0xe1f   :  { %v2746_v53 = vmax.f32 %v2688_v41, 0.0 }
 0xe20   :  { %v2932_v46 = vadd.f32 %v2931_v22, %v2829_v55  ;;  %v2739_v43 = vmax.f32 %v2683_v49, 0.0 }
 0xe21   :  { %v2850_v6 = vmul.f32 %v4959_v2, %v2746_v53 }
 0xe22   :  { %v2843_v62 = vmul.f32 %v4954_v57, %v2739_v43  ;;  %v2933_v17 = vadd.f32 %v2932_v46, %v2836_v12 }
 0xe24   :  { %v2934_v13 = vadd.f32 %v2933_v17, %v2843_v62 }
 0xe26   :  { %v2935_v27 = vadd.f32 %v2934_v13, %v2850_v6 }
 0xe28   :  { %v2936_v29 = vrot.slane %v2935_v27, 4 }
 0xe2a   :  { %v2937_v37 = vadd.f32 %v2936_v29, %v2935_v27 }
 0xe2c   :  { %v2938_v30 = vrot.slane %v2937_v37, 2 }
 0xe2e   :  { %v2939_v0 = vadd.f32 %v2938_v30, %v2937_v37 }
 0xe30   :  { %v2940_v4 = vrot.slane %v2939_v0, 1 }
 0xe32   :  { %v2941_v33 = vadd.f32 %v2940_v4, %v2939_v0 }
 0xe34   :  { %v2950_v36 = vadd.f32 %v4992_v21, %v2941_v33 }
 0xe36   :  { %v2956_v20 = vadd.f32 %v2955_v10, %v2950_v36 }
 0xe38   :  { %2957 = vst [vmem:[#allocation9] sm:$0x1] %v2956_v20 }
 0xe39   :  { %4140 = shalt.err (!%p4137_p6)
}
 0xe3a   :  { %s4141_s12 = scalar_lea.hbm %s5132_s10, 16 }
 0xe3b   :  { %p4142_p7 = scmp.ne.s32.totalorder %s5132_s10, %s4141_s12  ;;  %p4145_p8 = scmp.lt.u32.totalorder %s4141_s12, %s5132_s10 }
 0xe3d   :  { %p4147_p9 = pnand %p4145_p8, %p4142_p7 }
 0xe3f   :  { %4150 = shalt.err (!%p4147_p9)
}
 0xe40   :  { %2967 = dma.vmem_to_hbm [thread:$0]  %s2965_s4, 16, %s5132_s10, [#allocation6]  }
 0xe41   :  { %4155 = dma.done.wait [#allocation6], 16  }
 0xe42   :  { %4156 = vsyncadd [#allocation6], 4294967280 }
 0xe43   :  { %2971 = vsyncpa [#allocation5], 1 }
 0xe44   :  { %2972 = vsyncpa [#allocation8], 1 }
 0xe45   :  { %2973 = vsyncpa [#allocation6], 1 }

</bundles_post_ra>
